<compile_context>
chip_gen: v7x
topology: tpu7x:2x2x1
jax: 0.10.0
libtpu: 0.0.40
codegen_flags: <defaults>
</compile_context>

<pallas_src>
import functools

import jax
import jax.numpy as jnp
from jax.experimental import pallas as pl
from jax.experimental.pallas import tpu as pltpu


MXU_DTYPE = jnp.bfloat16   # operand dtype of the big MXU dots (f32 accumulation)
HP = 128                   # lane-dense padded hidden width (2*hidden_dim <= HP)

# w_stack layout: [4, HP, HP]
W_W12, W_W21, W_W22, W_WF1 = 0, 1, 2, 3
# b_stack layout: [8, HP]
ROW_W11, ROW_B11, ROW_B12, ROW_B21, ROW_B22, ROW_BF1, ROW_WF2T, ROW_BF2 = range(8)


# ---------------------------------------------------------------------------
# Fused Pallas kernel: grid = (layer phase, row block)
# ---------------------------------------------------------------------------

def gin_fused_kernel(a_ref, x_ref, pool_ref, w_ref, b_ref, o_ref,
                     h1_ref, acc_ref, *, tm):
    """GINConv(eps=0): z = x + sum_{j in N(i)} x_j ; MLP = Linear->ReLU->Linear->Dropout,
    followed by the model-level relu after each conv, then mean-pool -> fc1 -> relu -> fc2."""
    layer = pl.program_id(0)
    i = pl.program_id(1)
    nb = pl.num_programs(1)
    row0 = pl.multiple_of(i * tm, tm)

    bias = b_ref[...]                          # [8, HP] f32 (one vreg tile, resident)
    a_blk = a_ref[...].astype(MXU_DTYPE)       # [tm, N_pad] int8 -> MXU dtype (exact)

    # ---- phase 0: conv1 + relu, h1 row-block written to VMEM scratch ----------
    @pl.when(layer == 0)
    def _conv1():
        w11 = bias[ROW_W11:ROW_W11 + 1, :]
        b11 = bias[ROW_B11:ROW_B11 + 1, :]
        b12 = bias[ROW_B12:ROW_B12 + 1, :]
        # fan_in == 1 linearity: Linear(1,H)(x + A@x) = u + A@u + b11 with u = x * w11_row.
        u_all = x_ref[...] * w11                                    # [N_pad, HP] (VPU broadcast)
        u_blk = x_ref[pl.ds(row0, tm), :] * w11                     # [tm, HP]
        agg = jnp.dot(a_blk, u_all.astype(MXU_DTYPE),
                      preferred_element_type=jnp.float32)
        h = jnp.maximum(u_blk + agg + b11, 0.0)                     # MLP1 inner ReLU
        h1 = jnp.dot(h.astype(MXU_DTYPE), w_ref[W_W12],
                     preferred_element_type=jnp.float32) + b12
        h1_ref[pl.ds(row0, tm), :] = jnp.maximum(h1, 0.0)           # model-level relu

    # ---- phase 1: conv2 + relu, mean-pool accumulation, head on the last step --
    @pl.when(layer == 1)
    def _conv2_pool_head():
        @pl.when(i == 0)
        def _init():
            acc_ref[...] = jnp.zeros_like(acc_ref)

        b21 = bias[ROW_B21:ROW_B21 + 1, :]
        b22 = bias[ROW_B22:ROW_B22 + 1, :]
        h1_blk = h1_ref[pl.ds(row0, tm), :]                         # [tm, HP] f32
        agg = jnp.dot(a_blk, h1_ref[...].astype(MXU_DTYPE),
                      preferred_element_type=jnp.float32)           # [tm, HP]
        z = h1_blk + agg
        h = jnp.maximum(jnp.dot(z.astype(MXU_DTYPE), w_ref[W_W21],
                                preferred_element_type=jnp.float32) + b21, 0.0)
        h2 = jnp.maximum(jnp.dot(h.astype(MXU_DTYPE), w_ref[W_W22],
                                 preferred_element_type=jnp.float32) + b22, 0.0)
        # global_mean_pool, accumulated block-by-block: pooled += P[:, blk] @ h2_blk
        acc_ref[...] += jnp.dot(pool_ref[...], h2,
                                preferred_element_type=jnp.float32)

        @pl.when(i == nb - 1)
        def _head():
            bf1 = bias[ROW_BF1:ROW_BF1 + 1, :]
            wf2 = bias[ROW_WF2T:ROW_WF2T + 1, :]                    # fc2 weight as a row
            bf2 = bias[ROW_BF2:ROW_BF2 + 1, 0:1]                    # fc2 bias scalar
            g = jnp.maximum(jnp.dot(acc_ref[...].astype(MXU_DTYPE), w_ref[W_WF1],
                                    preferred_element_type=jnp.float32) + bf1, 0.0)
            o_ref[...] = jnp.sum(g * wf2, axis=-1, keepdims=True) + bf2


# ---------------------------------------------------------------------------
# Parameter init (nn.Linear default: U(-1/sqrt(fan_in), +1/sqrt(fan_in))), packed into
# one stacked weight tensor (MXU dtype) + one [8, HP] bias tensor.  Padded rows/cols are
# zero, so the math equals the unpadded model exactly.
# ---------------------------------------------------------------------------

def _linear_params(key, fan_in, fan_out):
    kw, kb = jax.random.split(key)
    bound = 1.0 / (fan_in ** 0.5)
    w = jax.random.uniform(kw, (fan_in, fan_out), jnp.float32, -bound, bound)
    b = jax.random.uniform(kb, (1, fan_out), jnp.float32, -bound, bound)
    return w, b


def _pad2(a, rows, cols):
    return jnp.pad(a, ((0, rows - a.shape[0]), (0, cols - a.shape[1])))


def init_gin_params(key, hidden_dim=64):
    assert 2 * hidden_dim <= HP, "padded width HP must cover 2*hidden_dim"
    ks = jax.random.split(key, 6)
    H, H2 = hidden_dim, 2 * hidden_dim
    w11, b11 = _linear_params(ks[0], 1, H)     # conv1 MLP: Linear(1,H)
    w12, b12 = _linear_params(ks[1], H, H)     #            Linear(H,H)
    w21, b21 = _linear_params(ks[2], H, H2)    # conv2 MLP: Linear(H,2H)
    w22, b22 = _linear_params(ks[3], H2, H2)   #            Linear(2H,2H)
    wf1, bf1 = _linear_params(ks[4], H2, H)    # fc1(2H,H)
    wf2, bf2 = _linear_params(ks[5], H, 1)     # fc2(H,1)

    w_stack = jnp.stack([_pad2(w12, HP, HP), _pad2(w21, HP, HP),
                         _pad2(w22, HP, HP), _pad2(wf1, HP, HP)]).astype(MXU_DTYPE)
    bf2_row = jnp.zeros((1, HP), jnp.float32).at[0, 0].set(bf2[0, 0])
    b_stack = jnp.concatenate([
        _pad2(w11, 1, HP), _pad2(b11, 1, HP), _pad2(b12, 1, HP),
        _pad2(b21, 1, HP), _pad2(b22, 1, HP), _pad2(bf1, 1, HP),
        _pad2(wf2.T, 1, HP), bf2_row], axis=0)                      # [8, HP] f32
    return dict(w_stack=w_stack, b_stack=b_stack)


# ---------------------------------------------------------------------------
# Wrapper glue
# ---------------------------------------------------------------------------

def _round_up(v, m):
    return (v + m - 1) // m * m


def _prepare_inputs(x, edge_index, batch, num_graphs, tm):
    n = x.shape[0]
    n_pad = _round_up(max(n, tm), tm)
    b_pad = _round_up(max(num_graphs, 8), 8)
    src, dst = edge_index[0], edge_index[1]
    # Dense target<-source adjacency built DIRECTLY in int8 (1 byte/elem; exact for
    # per-(dst,src) edge multiplicity <= 127).
    # TODO(synk): mask padded/dummy edges here if edge_index is ever padded to fixed E.
    adj = jnp.zeros((n_pad, n_pad), jnp.int8).at[dst, src].add(jnp.int8(1))
    x_p = jnp.pad(x.astype(jnp.float32), ((0, n_pad - n), (0, 0)))
    # Mean-pool matrix P[b, i] = 1/|graph b| for nodes of graph b (zero on padding).
    onehot = (batch[None, :] == jnp.arange(num_graphs)[:, None]).astype(jnp.float32)
    pool = onehot / jnp.maximum(onehot.sum(axis=1, keepdims=True), 1.0)
    pool_p = jnp.pad(pool, ((0, b_pad - num_graphs), (0, n_pad - n)))
    return adj, x_p, pool_p, n_pad, b_pad


def _vmem_limit_bytes(n_pad, b_pad, tm):
    wi = jnp.dtype(MXU_DTYPE).itemsize
    resident = (2 * tm * n_pad * 1            # int8 A row-tiles (double-buffered)
                + 2 * n_pad * 128 * 4         # x column (lane-padded) resident
                + 2 * b_pad * tm * 4          # pool column-tiles
                + 2 * 4 * HP * HP * wi        # stacked weights
                + 2 * 8 * HP * 4              # stacked bias rows
                + 2 * b_pad * 128 * 4         # output
                + n_pad * HP * 4              # h1 scratch
                + b_pad * HP * 4)             # pooled accumulator scratch
    temporaries = (n_pad * HP * (4 + 2 * wi)  # u_all / h1 MXU-dtype copies
                   + tm * n_pad * wi          # widened A tile
                   + 6 * tm * HP * 4)         # per-block activations
    need = resident + temporaries
    return int(min(max(need * 3 // 2 + (2 << 20), 16 << 20), 96 << 20))


@functools.partial(jax.jit, static_argnames=("num_graphs", "tm"))
def gin_forward(params, x, edge_index, batch, num_graphs, tm=256):
    assert tm % 128 == 0, "row-tile must be lane/sublane aligned"
    adj, x_p, pool_p, n_pad, b_pad = _prepare_inputs(x, edge_index, batch, num_graphs, tm)
    nb = n_pad // tm

    kernel = functools.partial(gin_fused_kernel, tm=tm)
    out = pl.pallas_call(
        kernel,
        out_shape=jax.ShapeDtypeStruct((b_pad, 1), jnp.float32),
        grid_spec=pltpu.PrefetchScalarGridSpec(
            num_scalar_prefetch=0,
            grid=(2, nb),                                            # (layer phase, row block)
            in_specs=[
                pl.BlockSpec((tm, n_pad), lambda l, i: (i, 0)),      # A row-tile (streamed; re-read per layer)
                pl.BlockSpec((n_pad, 1), lambda l, i: (0, 0)),       # x, resident
                pl.BlockSpec((b_pad, tm), lambda l, i: (0, i)),      # pool column-tile
                pl.BlockSpec((4, HP, HP), lambda l, i: (0, 0, 0)),   # stacked weights, resident
                pl.BlockSpec((8, HP), lambda l, i: (0, 0)),          # stacked biases, resident
            ],
            out_specs=pl.BlockSpec((b_pad, 1), lambda l, i: (0, 0)),
            scratch_shapes=[
                pltpu.VMEM((n_pad, HP), jnp.float32),                # h1 (carried layer0 -> layer1)
                pltpu.VMEM((b_pad, HP), jnp.float32),                # pooled accumulator
            ],
        ),
        compiler_params=pltpu.CompilerParams(
            # h1 scratch + pooled accumulator carry state across row blocks -> sequential.
            dimension_semantics=("arbitrary", "arbitrary"),
            vmem_limit_bytes=_vmem_limit_bytes(n_pad, b_pad, tm),
        ),
    )(adj, x_p, pool_p, params["w_stack"], params["b_stack"])
    return out[:num_graphs]


# ---------------------------------------------------------------------------
# Pure-JAX reference (same padding and same MXU-dtype policy as the kernel)
# ---------------------------------------------------------------------------

def gin_forward_ref(params, x, edge_index, batch, num_graphs, tm=256):
    adj, x_p, pool_p, _, _ = _prepare_inputs(x, edge_index, batch, num_graphs, tm)
    w, b = params["w_stack"], params["b_stack"]
    w11 = b[ROW_W11:ROW_W11 + 1, :]
    b11 = b[ROW_B11:ROW_B11 + 1, :]
    b12 = b[ROW_B12:ROW_B12 + 1, :]
    b21 = b[ROW_B21:ROW_B21 + 1, :]
    b22 = b[ROW_B22:ROW_B22 + 1, :]
    bf1 = b[ROW_BF1:ROW_BF1 + 1, :]
    wf2 = b[ROW_WF2T:ROW_WF2T + 1, :]
    bf2 = b[ROW_BF2:ROW_BF2 + 1, 0:1]

    def mdot(p, q):   # mirrors the kernel's MXU-dtype operand / f32-accumulate dots
        return jnp.dot(p.astype(MXU_DTYPE), q.astype(MXU_DTYPE),
                       preferred_element_type=jnp.float32)

    u = x_p * w11
    h = jnp.maximum(u + mdot(adj, u) + b11, 0.0)
    h1 = jnp.maximum(mdot(h, w[W_W12]) + b12, 0.0)
    z = h1 + mdot(adj, h1)
    h = jnp.maximum(mdot(z, w[W_W21]) + b21, 0.0)
    h2 = jnp.maximum(mdot(h, w[W_W22]) + b22, 0.0)
    pooled = jnp.dot(pool_p, h2, preferred_element_type=jnp.float32)
    g = jnp.maximum(mdot(pooled, w[W_WF1]) + bf1, 0.0)
    out = jnp.sum(g * wf2, axis=-1, keepdims=True) + bf2
    return out[:num_graphs]


# ---------------------------------------------------------------------------
# Demo
# ---------------------------------------------------------------------------

if __name__ == "__main__":
    key = jax.random.PRNGKey(0)
    k_param, k_x, k_src, k_dst = jax.random.split(key, 4)

    hidden_dim = 64            # module default
    num_graphs = 2
    nodes_per_graph = 100      # 2 graphs x 100 nodes -> N padded to 256, two row blocks
    num_nodes = num_graphs * nodes_per_graph
    num_edges = 512

    params = init_gin_params(k_param, hidden_dim)

    # Node features [N, 1] (GINConv nn1 starts with Linear(1, hidden_dim)).
    x = jax.random.normal(k_x, (num_nodes, 1), jnp.float32)

    # Random intra-graph edges [2, E] (row 0 = source, row 1 = target).
    graph_of_edge = jnp.arange(num_edges) % num_graphs
    src = jax.random.randint(k_src, (num_edges,), 0, nodes_per_graph) + graph_of_edge * nodes_per_graph
    dst = jax.random.randint(k_dst, (num_edges,), 0, nodes_per_graph) + graph_of_edge * nodes_per_graph
    edge_index = jnp.stack([src, dst]).astype(jnp.int32)
    batch = (jnp.arange(num_nodes) // nodes_per_graph).astype(jnp.int32)

    # tm=128 exercises the streamed-A / carried-h1 pipeline (grid = (2, 2));
    # tm=256 (default) is the large-graph configuration.
    out = gin_forward(params, x, edge_index, batch, num_graphs=num_graphs, tm=128)
    out = jax.block_until_ready(out)

    ref = gin_forward_ref(params, x, edge_index, batch, num_graphs=num_graphs, tm=128)
    assert out.shape == (num_graphs, 1)
    # Tolerance covers f32 accumulation-order differences between the Mosaic and XLA paths
    # (the bf16 operand quantization is identical in both); structural bugs are orders larger.
    assert jnp.allclose(out, ref, atol=1e-2, rtol=1e-2), (out, ref)

    print("KERNEL_OK")
</pallas_src>

<mosaic_0001>
module attributes {stable_mosaic.version = 11 : i64} {
  func.func @gin_fused_kernel(%arg0: i32, %arg1: i32, %arg2: memref<128x256xi8, #tpu.memory_space<vmem>>, %arg3: memref<256x1xf32, #tpu.memory_space<vmem>>, %arg4: memref<8x128xf32, #tpu.memory_space<vmem>>, %arg5: memref<4x128x128xbf16, #tpu.memory_space<vmem>>, %arg6: memref<8x128xf32, #tpu.memory_space<vmem>>, %arg7: memref<8x1xf32, #tpu.memory_space<vmem>>, %arg8: memref<256x128xf32, #tpu.memory_space<vmem>>, %arg9: memref<8x128xf32, #tpu.memory_space<vmem>>) attributes {dimension_semantics = [#tpu.dimension_semantics<arbitrary>, #tpu.dimension_semantics<arbitrary>], iteration_bounds = array<i64: 2, 2>, scalar_prefetch = 0 : i64, scratch_operands = 2 : i64, tpu.core_type = #tpu.core_type<tc>, window_params = [{transform_indices = @transform_0, window_bounds = array<i64: 128, 256>}, {pipeline_mode = #tpu.pipeline_mode<synchronous>, transform_indices = @transform_1, window_bounds = array<i64: 256, 1>}, {transform_indices = @transform_2, window_bounds = array<i64: 8, 128>}, {pipeline_mode = #tpu.pipeline_mode<synchronous>, transform_indices = @transform_3, window_bounds = array<i64: 4, 128, 128>}, {pipeline_mode = #tpu.pipeline_mode<synchronous>, transform_indices = @transform_4, window_bounds = array<i64: 8, 128>}, {pipeline_mode = #tpu.pipeline_mode<synchronous>, transform_indices = @transform_5, window_bounds = array<i64: 8, 1>}]} {
    %c128_i32 = arith.constant 128 : i32
    %0 = arith.muli %arg1, %c128_i32 : i32
    %1 = tpu.assume_multiple %0, 128 : i32
    %c0 = arith.constant 0 : index
    %c0_0 = arith.constant 0 : index
    %2 = vector.load %arg6[%c0, %c0_0] : memref<8x128xf32, #tpu.memory_space<vmem>>, vector<8x128xf32>
    %c0_1 = arith.constant 0 : index
    %c0_2 = arith.constant 0 : index
    %3 = vector.load %arg2[%c0_1, %c0_2] : memref<128x256xi8, #tpu.memory_space<vmem>>, vector<128x256xi8>
    %4 = arith.sitofp %3 : vector<128x256xi8> to vector<128x256xbf16>
    %c0_i32 = arith.constant 0 : i32
    %5 = arith.cmpi eq, %arg0, %c0_i32 : i32
    %6 = arith.extui %5 : i1 to i32
    %c0_i32_3 = arith.constant 0 : i32
    %7 = arith.cmpi ne, %6, %c0_i32_3 : i32
    scf.if %7 {
      %11 = vector.extract_strided_slice %2 {offsets = [0, 0], sizes = [1, 128], strides = [1, 1]} : vector<8x128xf32> to vector<1x128xf32>
      %12 = vector.extract_strided_slice %2 {offsets = [1, 0], sizes = [1, 128], strides = [1, 1]} : vector<8x128xf32> to vector<1x128xf32>
      %13 = vector.extract_strided_slice %2 {offsets = [2, 0], sizes = [1, 128], strides = [1, 1]} : vector<8x128xf32> to vector<1x128xf32>
      %c0_5 = arith.constant 0 : index
      %c0_6 = arith.constant 0 : index
      %14 = vector.load %arg3[%c0_5, %c0_6] : memref<256x1xf32, #tpu.memory_space<vmem>>, vector<256x1xf32>
      %15 = vector.broadcast %14 : vector<256x1xf32> to vector<256x128xf32>
      %16 = vector.broadcast %11 : vector<1x128xf32> to vector<256x128xf32>
      %17 = arith.mulf %15, %16 : vector<256x128xf32>
      %18 = arith.index_cast %1 : i32 to index
      %c0_7 = arith.constant 0 : index
      %19 = vector.load %arg3[%18, %c0_7] : memref<256x1xf32, #tpu.memory_space<vmem>>, vector<128x1xf32>
      %20 = vector.broadcast %19 : vector<128x1xf32> to vector<128x128xf32>
      %21 = vector.broadcast %11 : vector<1x128xf32> to vector<128x128xf32>
      %22 = arith.mulf %20, %21 : vector<128x128xf32>
      %23 = arith.truncf %17 : vector<256x128xf32> to vector<256x128xbf16>
      %cst = arith.constant dense<0.000000e+00> : vector<128x128xf32>
      %24 = tpu.matmul %4, %23, %cst {dimension_numbers = #tpu.dot_dimension_numbers<[1], [0], [0], [1], [0, 0, 1, 1], [], []>} : vector<128x256xbf16>, vector<256x128xbf16>, vector<128x128xf32> -> vector<128x128xf32>
      %25 = arith.addf %22, %24 : vector<128x128xf32>
      %26 = vector.broadcast %12 : vector<1x128xf32> to vector<128x128xf32>
      %27 = arith.addf %25, %26 : vector<128x128xf32>
      %cst_8 = arith.constant 0.000000e+00 : f32
      %28 = vector.broadcast %cst_8 : f32 to vector<128x128xf32>
      %29 = arith.maximumf %27, %28 : vector<128x128xf32>
      %30 = arith.truncf %29 : vector<128x128xf32> to vector<128x128xbf16>
      %c0_9 = arith.constant 0 : index
      %c0_10 = arith.constant 0 : index
      %c0_11 = arith.constant 0 : index
      %31 = vector.load %arg5[%c0_9, %c0_10, %c0_11] : memref<4x128x128xbf16, #tpu.memory_space<vmem>>, vector<1x128x128xbf16>
      %32 = vector.shape_cast %31 : vector<1x128x128xbf16> to vector<128x128xbf16>
      %cst_12 = arith.constant dense<0.000000e+00> : vector<128x128xf32>
      %33 = tpu.matmul %30, %32, %cst_12 {dimension_numbers = #tpu.dot_dimension_numbers<[1], [0], [0], [1], [0, 0, 1, 1], [], []>} : vector<128x128xbf16>, vector<128x128xbf16>, vector<128x128xf32> -> vector<128x128xf32>
      %34 = vector.broadcast %13 : vector<1x128xf32> to vector<128x128xf32>
      %35 = arith.addf %33, %34 : vector<128x128xf32>
      %cst_13 = arith.constant 0.000000e+00 : f32
      %36 = vector.broadcast %cst_13 : f32 to vector<128x128xf32>
      %37 = arith.maximumf %35, %36 : vector<128x128xf32>
      %38 = arith.index_cast %1 : i32 to index
      %c0_14 = arith.constant 0 : index
      %39 = vector.load %arg8[%38, %c0_14] : memref<256x128xf32, #tpu.memory_space<vmem>>, vector<128x128xf32>
      tpu.vector_store %arg8[%38, %c0_14], %37 {strides = array<i32>} : memref<256x128xf32, #tpu.memory_space<vmem>>, vector<128x128xf32>,
    } else {
    }
    %c1_i32 = arith.constant 1 : i32
    %8 = arith.cmpi eq, %arg0, %c1_i32 : i32
    %9 = arith.extui %8 : i1 to i32
    %c0_i32_4 = arith.constant 0 : i32
    %10 = arith.cmpi ne, %9, %c0_i32_4 : i32
    scf.if %10 {
      %c0_i32_5 = arith.constant 0 : i32
      %11 = arith.cmpi eq, %arg1, %c0_i32_5 : i32
      %12 = arith.extui %11 : i1 to i32
      %c0_i32_6 = arith.constant 0 : i32
      %13 = arith.cmpi ne, %12, %c0_i32_6 : i32
      scf.if %13 {
        %cst_27 = arith.constant 0.000000e+00 : f32
        %46 = vector.broadcast %cst_27 : f32 to vector<8x128xf32>
        %c0_28 = arith.constant 0 : index
        %c0_29 = arith.constant 0 : index
        %47 = vector.load %arg9[%c0_28, %c0_29] : memref<8x128xf32, #tpu.memory_space<vmem>>, vector<8x128xf32>
        tpu.vector_store %arg9[%c0_28, %c0_29], %46 {strides = array<i32>} : memref<8x128xf32, #tpu.memory_space<vmem>>, vector<8x128xf32>,
      } else {
      }
      %14 = vector.extract_strided_slice %2 {offsets = [3, 0], sizes = [1, 128], strides = [1, 1]} : vector<8x128xf32> to vector<1x128xf32>
      %15 = vector.extract_strided_slice %2 {offsets = [4, 0], sizes = [1, 128], strides = [1, 1]} : vector<8x128xf32> to vector<1x128xf32>
      %16 = arith.index_cast %1 : i32 to index
      %c0_7 = arith.constant 0 : index
      %17 = vector.load %arg8[%16, %c0_7] : memref<256x128xf32, #tpu.memory_space<vmem>>, vector<128x128xf32>
      %c0_8 = arith.constant 0 : index
      %c0_9 = arith.constant 0 : index
      %18 = vector.load %arg8[%c0_8, %c0_9] : memref<256x128xf32, #tpu.memory_space<vmem>>, vector<256x128xf32>
      %19 = arith.truncf %18 : vector<256x128xf32> to vector<256x128xbf16>
      %cst = arith.constant dense<0.000000e+00> : vector<128x128xf32>
      %20 = tpu.matmul %4, %19, %cst {dimension_numbers = #tpu.dot_dimension_numbers<[1], [0], [0], [1], [0, 0, 1, 1], [], []>} : vector<128x256xbf16>, vector<256x128xbf16>, vector<128x128xf32> -> vector<128x128xf32>
      %21 = arith.addf %17, %20 : vector<128x128xf32>
      %22 = arith.truncf %21 : vector<128x128xf32> to vector<128x128xbf16>
      %c1 = arith.constant 1 : index
      %c0_10 = arith.constant 0 : index
      %c0_11 = arith.constant 0 : index
      %23 = vector.load %arg5[%c1, %c0_10, %c0_11] : memref<4x128x128xbf16, #tpu.memory_space<vmem>>, vector<1x128x128xbf16>
      %24 = vector.shape_cast %23 : vector<1x128x128xbf16> to vector<128x128xbf16>
      %cst_12 = arith.constant dense<0.000000e+00> : vector<128x128xf32>
      %25 = tpu.matmul %22, %24, %cst_12 {dimension_numbers = #tpu.dot_dimension_numbers<[1], [0], [0], [1], [0, 0, 1, 1], [], []>} : vector<128x128xbf16>, vector<128x128xbf16>, vector<128x128xf32> -> vector<128x128xf32>
      %26 = vector.broadcast %14 : vector<1x128xf32> to vector<128x128xf32>
      %27 = arith.addf %25, %26 : vector<128x128xf32>
      %cst_13 = arith.constant 0.000000e+00 : f32
      %28 = vector.broadcast %cst_13 : f32 to vector<128x128xf32>
      %29 = arith.maximumf %27, %28 : vector<128x128xf32>
      %30 = arith.truncf %29 : vector<128x128xf32> to vector<128x128xbf16>
      %c2 = arith.constant 2 : index
      %c0_14 = arith.constant 0 : index
      %c0_15 = arith.constant 0 : index
      %31 = vector.load %arg5[%c2, %c0_14, %c0_15] : memref<4x128x128xbf16, #tpu.memory_space<vmem>>, vector<1x128x128xbf16>
      %32 = vector.shape_cast %31 : vector<1x128x128xbf16> to vector<128x128xbf16>
      %cst_16 = arith.constant dense<0.000000e+00> : vector<128x128xf32>
      %33 = tpu.matmul %30, %32, %cst_16 {dimension_numbers = #tpu.dot_dimension_numbers<[1], [0], [0], [1], [0, 0, 1, 1], [], []>} : vector<128x128xbf16>, vector<128x128xbf16>, vector<128x128xf32> -> vector<128x128xf32>
      %34 = vector.broadcast %15 : vector<1x128xf32> to vector<128x128xf32>
      %35 = arith.addf %33, %34 : vector<128x128xf32>
      %cst_17 = arith.constant 0.000000e+00 : f32
      %36 = vector.broadcast %cst_17 : f32 to vector<128x128xf32>
      %37 = arith.maximumf %35, %36 : vector<128x128xf32>
      %c0_18 = arith.constant 0 : index
      %c0_19 = arith.constant 0 : index
      %38 = vector.load %arg9[%c0_18, %c0_19] : memref<8x128xf32, #tpu.memory_space<vmem>>, vector<8x128xf32>
      %c0_20 = arith.constant 0 : index
      %c0_21 = arith.constant 0 : index
      %39 = vector.load %arg4[%c0_20, %c0_21] : memref<8x128xf32, #tpu.memory_space<vmem>>, vector<8x128xf32>
      %cst_22 = arith.constant dense<0.000000e+00> : vector<8x128xf32>
      %40 = tpu.matmul %39, %37, %cst_22 {dimension_numbers = #tpu.dot_dimension_numbers<[1], [0], [0], [1], [0, 0, 1, 1], [], []>} : vector<8x128xf32>, vector<128x128xf32>, vector<8x128xf32> -> vector<8x128xf32>
      %41 = arith.addf %38, %40 : vector<8x128xf32>
      %c0_23 = arith.constant 0 : index
      %c0_24 = arith.constant 0 : index
      %42 = vector.load %arg9[%c0_23, %c0_24] : memref<8x128xf32, #tpu.memory_space<vmem>>, vector<8x128xf32>
      tpu.vector_store %arg9[%c0_23, %c0_24], %41 {strides = array<i32>} : memref<8x128xf32, #tpu.memory_space<vmem>>, vector<8x128xf32>,
      %c1_i32_25 = arith.constant 1 : i32
      %43 = arith.cmpi eq, %arg1, %c1_i32_25 : i32
      %44 = arith.extui %43 : i1 to i32
      %c0_i32_26 = arith.constant 0 : i32
      %45 = arith.cmpi ne, %44, %c0_i32_26 : i32
      scf.if %45 {
        %46 = vector.extract_strided_slice %2 {offsets = [5, 0], sizes = [1, 128], strides = [1, 1]} : vector<8x128xf32> to vector<1x128xf32>
        %47 = vector.extract_strided_slice %2 {offsets = [6, 0], sizes = [1, 128], strides = [1, 1]} : vector<8x128xf32> to vector<1x128xf32>
        %48 = vector.extract_strided_slice %2 {offsets = [7, 0], sizes = [1, 1], strides = [1, 1]} : vector<8x128xf32> to vector<1x1xf32>
        %c0_27 = arith.constant 0 : index
        %c0_28 = arith.constant 0 : index
        %49 = vector.load %arg9[%c0_27, %c0_28] : memref<8x128xf32, #tpu.memory_space<vmem>>, vector<8x128xf32>
        %50 = arith.truncf %49 : vector<8x128xf32> to vector<8x128xbf16>
        %c3 = arith.constant 3 : index
        %c0_29 = arith.constant 0 : index
        %c0_30 = arith.constant 0 : index
        %51 = vector.load %arg5[%c3, %c0_29, %c0_30] : memref<4x128x128xbf16, #tpu.memory_space<vmem>>, vector<1x128x128xbf16>
        %52 = vector.shape_cast %51 : vector<1x128x128xbf16> to vector<128x128xbf16>
        %cst_31 = arith.constant dense<0.000000e+00> : vector<8x128xf32>
        %53 = tpu.matmul %50, %52, %cst_31 {dimension_numbers = #tpu.dot_dimension_numbers<[1], [0], [0], [1], [0, 0, 1, 1], [], []>} : vector<8x128xbf16>, vector<128x128xbf16>, vector<8x128xf32> -> vector<8x128xf32>
        %54 = vector.broadcast %46 : vector<1x128xf32> to vector<8x128xf32>
        %55 = arith.addf %53, %54 : vector<8x128xf32>
        %cst_32 = arith.constant 0.000000e+00 : f32
        %56 = vector.broadcast %cst_32 : f32 to vector<8x128xf32>
        %57 = arith.maximumf %55, %56 : vector<8x128xf32>
        %58 = vector.broadcast %47 : vector<1x128xf32> to vector<8x128xf32>
        %59 = arith.mulf %57, %58 : vector<8x128xf32>
        %cst_33 = arith.constant dense<0.000000e+00> : vector<8xf32>
        %60 = vector.multi_reduction <add>, %59, %cst_33 [1] : vector<8x128xf32> to vector<8xf32>
        %61 = vector.shape_cast %60 : vector<8xf32> to vector<8x1xf32>
        %62 = vector.broadcast %48 : vector<1x1xf32> to vector<8x1xf32>
        %63 = arith.addf %61, %62 : vector<8x1xf32>
        %c0_34 = arith.constant 0 : index
        %c0_35 = arith.constant 0 : index
        %64 = vector.load %arg7[%c0_34, %c0_35] : memref<8x1xf32, #tpu.memory_space<vmem>>, vector<8x1xf32>
        tpu.vector_store %arg7[%c0_34, %c0_35], %63 {strides = array<i32>} : memref<8x1xf32, #tpu.memory_space<vmem>>, vector<8x1xf32>,
      } else {
      }
    } else {
    }
    return
  }
  func.func @transform_0(%arg0: i32, %arg1: i32) -> (i32, i32) {
    %c0_i32 = arith.constant 0 : i32
    %c0_i32_0 = arith.constant 0 : i32
    return %arg1, %c0_i32 : i32, i32
  }
  func.func @transform_1(%arg0: i32, %arg1: i32) -> (i32, i32) {
    %c0_i32 = arith.constant 0 : i32
    %c0_i32_0 = arith.constant 0 : i32
    %c0_i32_1 = arith.constant 0 : i32
    return %c0_i32, %c0_i32_0 : i32, i32
  }
  func.func @transform_2(%arg0: i32, %arg1: i32) -> (i32, i32) {
    %c0_i32 = arith.constant 0 : i32
    %c0_i32_0 = arith.constant 0 : i32
    return %c0_i32, %arg1 : i32, i32
  }
  func.func @transform_3(%arg0: i32, %arg1: i32) -> (i32, i32, i32) {
    %c0_i32 = arith.constant 0 : i32
    %c0_i32_0 = arith.constant 0 : i32
    %c0_i32_1 = arith.constant 0 : i32
    %c0_i32_2 = arith.constant 0 : i32
    return %c0_i32, %c0_i32_0, %c0_i32_1 : i32, i32, i32
  }
  func.func @transform_4(%arg0: i32, %arg1: i32) -> (i32, i32) {
    %c0_i32 = arith.constant 0 : i32
    %c0_i32_0 = arith.constant 0 : i32
    %c0_i32_1 = arith.constant 0 : i32
    return %c0_i32, %c0_i32_0 : i32, i32
  }
  func.func @transform_5(%arg0: i32, %arg1: i32) -> (i32, i32) {
    %c0_i32 = arith.constant 0 : i32
    %c0_i32_0 = arith.constant 0 : i32
    %c0_i32_1 = arith.constant 0 : i32
    return %c0_i32, %c0_i32_0 : i32, i32
  }
}

</mosaic_0001>

<bundles_post_ra>
// kernel: gin_forward.1
= control target key start
LH: loop header
LB: loop body
LE: loop exit
PB: predicated region body
PF: predicated region fallthrough
CT: control target
= control target key end

     0   :  { %s2646_s18 = smov 0   ;;  %s2648_s19 = smov 0   ;;  %s3166_s0 = inlined_call_operand.vmem [shape: s8[256,256], index: 0, kind: input, shape index: {}]   ;;  %s3167_s1 = inlined_call_operand.vmem [shape: f32[256,1], index: 1, kind: input, shape index: {}]   ;;  %s3168_s2 = inlined_call_operand.vmem [shape: f32[8,256], index: 2, kind: input, shape index: {}]   ;;  %s3169_s3 = inlined_call_operand.vmem [shape: bf16[4,128,128], index: 3, kind: input, shape index: {}]   ;;  %s3170_s4 = inlined_call_operand.vmem [shape: f32[8,128], index: 4, kind: input, shape index: {}]   ;;  %s3171_s5 = inlined_call_operand.vmem [shape: f32[8,1], index: 5, kind: output, shape index: {}]  }
   0x1   :  { %s2650_s20 = smov 0   ;;  %s2652_s21 = smov 0  }
   0x2   :  { %s2654_s22 = smov 0  }
   0x3 LB: > { %s24_s23 = sadd.s32 1, %s2599_s20  ;;  %s27_s24 = sadd.s32 1, %s2603_s21  ;;  %s2607_s22 = sphi %s2654_s22, %s15_s22   ;;  %s2603_s21 = sphi %s2652_s21, %s3175_s21   ;;  %s2599_s20 = sphi %s2650_s20, %s3174_s20   ;;  %s2595_s19 = sphi %s2648_s19, %s3173_s19   ;;  %s2591_s18 = sphi %s2646_s18, %s3172_s18  }
   0x4   : > { %p25_p0 = scmp.ge.s32.totalorder %s24_s23, 2  ;;  %p1986_p1 = scmp.ge.s32.totalorder %s2607_s22, 1 }
   0x5   : > { %p205_p2 = scmp.lt.s32.totalorder %s2607_s22, 5 }
   0x6   : > { %s3177_s23 = smov (%p25_p0, %s24_s23), 0  ;;  %s3179_s24 = smov (!%p25_p0, %s27_s24), %s2603_s21 }
   0x7   : > { %p206_p3 = pnand %p1986_p1, %p205_p2  ;;  %p29_p4 = scmp.ge.s32.totalorder %s3179_s24, 2 }
   0x8   : > { %s1987_s25 = sshll.u32 (!%p206_p3), %s2591_s18, 4  ;;  %p240_p5 = scmp.lt.s32.totalorder (!%p206_p3), %s2591_s18, 1  ;;  %v2685_v0 = vld [vmem:[%s3170_s4] sm:$0xff] (!%p206_p3) }
   0x9   : > { %s3181_s24 = smov (%p29_p4, %s3179_s24), 0  ;;  %209 = sbr.rel (%p206_p3) target bundleno = 2080 (0x820), region = 40 }
   0xa   : > { %p234_p6 = scmp.lt.s32.totalorder (!%p206_p3), %s1987_s25, 31  ;;  %s2688_s28 = sshll.u32 (!%p206_p3), %s2591_s18, 7 }
   0xb   : > { %p1992_p7 = scmp.ne.s32.totalorder (!%p206_p3), %s2595_s19, 0 }
  0x10   : > { %s241_s29 = scalar_select %p240_p5, %s2591_s18, 1 }
  0x11   : > { %s3183_s25 = smov (!%p234_p6, %s1987_s25), 31  ;;  %v299_v25 = vld [vmem:[%s3167_s1 + $0x80] sm:$0xff] (!%p1992_p7)  ;;  %v2609_v27 = vmov (!%p1992_p7), 0   ;;  %v300_v28 = vld [vmem:[%s3167_s1 + $0x88] sm:$0xff] (!%p1992_p7)  ;;  %v301_v30 = vld [vmem:[%s3167_s1 + $0x90] sm:$0xff] (!%p1992_p7)  ;;  %s2832_s15 = scalar_lea.vmem (!%p1992_p7), %s3167_s1, %s2688_s28 }
  0x12   : > { %s1990_s30 = sshll.u32 %s241_s29, 3  ;;  %s2110_s6 = sshll.u32 %s3183_s25, 2  ;;  %v283_v26 = vld [vmem:[%s3167_s1] sm:$0xff] (!%p1992_p7)  ;;  %2536 = vset.pattern.permute.xlu1 (!%p1992_p7), %v2609_v27  ;;  %2535 = vset.pattern.permute.xlu0 (!%p1992_p7), %v2609_v27  ;;  %v284_v29 = vld [vmem:[%s3167_s1 + $0x8] sm:$0xff] (!%p1992_p7)  ;;  %v302_v31 = vld [vmem:[%s3167_s1 + $0x98] sm:$0xff] (!%p1992_p7) }
  0x13   : > { %s2694_s9 = scalar_lea.vmem %s3168_s2, %s1990_s30  ;;  %s238_s12 = scalar_lea.vmem %s3166_s0, %s2110_s6  ;;  %397 = vperm.xlu0 (!%p1992_p7), %2535, %v299_v25   ;;  %317 = vperm.xlu1 (!%p1992_p7), %2536, %v283_v26   ;;  %v285_v32 = vld [vmem:[%s3167_s1 + $0x10] sm:$0xff] (!%p1992_p7)  ;;  %v286_v33 = vld [vmem:[%s3167_s1 + $0x18] sm:$0xff] (!%p1992_p7)  ;;  %v303_v34 = vld [vmem:[%s3167_s1 + $0xa0] sm:$0xff] (!%p1992_p7) }
  0x14   : > { %v247_v1 = vld [vmem:[%s238_s12] sm:$0xff]   ;;  %v249_v2 = vld [vmem:[%s238_s12 + $0x8] sm:$0xff]   ;;  %v251_v3 = vld [vmem:[%s238_s12 + $0x10] sm:$0xff]   ;;  %282 = sbr.rel (%p1992_p7) target bundleno = 715 (0x2cb), region = 44  ;;  %s2983_s16 = scalar_lea.vmem (!%p1992_p7), [#allocation2], %s2688_s28 }
  0x15   : > { %v253_v4 = vld [vmem:[%s238_s12 + $0x18] sm:$0xff]   ;;  %v255_v5 = vld [vmem:[%s238_s12 + $0x20] sm:$0xff]   ;;  %v257_v6 = vld [vmem:[%s238_s12 + $0x28] sm:$0xff]   ;;  %v2699_v7 = vunpack.c.l.s8.bf16 %v247_v1  ;;  %v2701_v8 = vunpack.c.h.s8.bf16 %v247_v1  ;;  %v2703_v9 = vunpack.c.l.s8.bf16 %v249_v2  ;;  %v2705_v10 = vunpack.c.h.s8.bf16 %v249_v2 }
  0x16   : > { %v259_v11 = vld [vmem:[%s238_s12 + $0x30] sm:$0xff]   ;;  %v261_v12 = vld [vmem:[%s238_s12 + $0x38] sm:$0xff]   ;;  %v2707_v13 = vunpack.c.l.s8.bf16 %v251_v3  ;;  %v2709_v14 = vunpack.c.h.s8.bf16 %v251_v3  ;;  %v2711_v15 = vunpack.c.l.s8.bf16 %v253_v4  ;;  %v2713_v16 = vunpack.c.h.s8.bf16 %v253_v4  ;;  %v304_v35 = vld [vmem:[%s3167_s1 + $0xa8] sm:$0xff] (!%p1992_p7) }
  0x17   : > { %v2715_v17 = vunpack.c.l.s8.bf16 %v255_v5  ;;  %v2717_v18 = vunpack.c.h.s8.bf16 %v255_v5  ;;  %v2719_v19 = vunpack.c.l.s8.bf16 %v257_v6  ;;  %v2721_v20 = vunpack.c.h.s8.bf16 %v257_v6  ;;  %402 = vperm.xlu0 (!%p1992_p7), %2535, %v300_v28   ;;  %322 = vperm.xlu1 (!%p1992_p7), %2536, %v284_v29   ;;  %v287_v36 = vld [vmem:[%s3167_s1 + $0x20] sm:$0xff] (!%p1992_p7)  ;;  %v288_v37 = vld [vmem:[%s3167_s1 + $0x28] sm:$0xff] (!%p1992_p7)  ;;  %v305_v38 = vld [vmem:[%s3167_s1 + $0xb0] sm:$0xff] (!%p1992_p7) }
  0x18   : > { %v2723_v21 = vunpack.c.l.s8.bf16 %v259_v11  ;;  %v2725_v22 = vunpack.c.h.s8.bf16 %v259_v11  ;;  %v2727_v23 = vunpack.c.l.s8.bf16 %v261_v12  ;;  %v2729_v24 = vunpack.c.h.s8.bf16 %v261_v12  ;;  %v306_v39 = vld [vmem:[%s3167_s1 + $0xb8] sm:$0xff] (!%p1992_p7)  ;;  %v289_v40 = vld [vmem:[%s3167_s1 + $0x30] sm:$0xff] (!%p1992_p7)  ;;  %v307_v42 = vld [vmem:[%s3167_s1 + $0xc0] sm:$0xff] (!%p1992_p7) }
  0x19   : > { %v290_v41 = vld [vmem:[%s3167_s1 + $0x38] sm:$0xff] (!%p1992_p7)  ;;  %v308_v43 = vld [vmem:[%s3167_s1 + $0xc8] sm:$0xff] (!%p1992_p7)  ;;  %v291_v44 = vld [vmem:[%s3167_s1 + $0x40] sm:$0xff] (!%p1992_p7)  ;;  %v1994_v60 = vcombine.high (!%p1992_p7), %v2699_v7, %v2701_v8  ;;  %v475_v28 = vlaneseq (!%p1992_p7) }
  0x1a   : > { %v292_v45 = vld [vmem:[%s3167_s1 + $0x48] sm:$0xff] (!%p1992_p7)  ;;  %v309_v46 = vld [vmem:[%s3167_s1 + $0xd0] sm:$0xff] (!%p1992_p7)  ;;  %v310_v47 = vld [vmem:[%s3167_s1 + $0xd8] sm:$0xff] (!%p1992_p7) }
  0x1b   : > { %407 = vperm.xlu0 %2535, %v301_v30   ;;  %412 = vperm.xlu1 %2536, %v302_v31   ;;  %v293_v48 = vld [vmem:[%s3167_s1 + $0x50] sm:$0xff]  ;;  %v294_v49 = vld [vmem:[%s3167_s1 + $0x58] sm:$0xff]  ;;  %v311_v50 = vld [vmem:[%s3167_s1 + $0xe0] sm:$0xff]  ;;  %v2852_v29 = vshrl.u32 %v475_v28, 7 }
  0x1c   : > { %v312_v51 = vld [vmem:[%s3167_s1 + $0xe8] sm:$0xff]  ;;  %v295_v52 = vld [vmem:[%s3167_s1 + $0x60] sm:$0xff]  ;;  %v313_v54 = vld [vmem:[%s3167_s1 + $0xf0] sm:$0xff]  ;;  %752 = vmatprep.mubr.bf16.mxu0 %v1994_v60 }
  0x1d   : > { %v296_v53 = vld [vmem:[%s3167_s1 + $0x68] sm:$0xff]  ;;  %v314_v55 = vld [vmem:[%s3167_s1 + $0xf8] sm:$0xff]  ;;  %v297_v56 = vld [vmem:[%s3167_s1 + $0x70] sm:$0xff] }
  0x1e   : > { %v298_v57 = vld [vmem:[%s3167_s1 + $0x78] sm:$0xff]  ;;  %v512_v58 = vld [vmem:[%s2832_s15] sm:$0xff]  ;;  %v513_v59 = vld [vmem:[%s2832_s15 + $0x8] sm:$0xff] }
  0x1f   : > { %327 = vperm.xlu0 %2535, %v285_v32   ;;  %332 = vperm.xlu1 %2536, %v286_v33   ;;  %v514_v61 = vld [vmem:[%s2832_s15 + $0x10] sm:$0xff]  ;;  %v515_v62 = vld [vmem:[%s2832_s15 + $0x18] sm:$0xff]  ;;  %v516_v63 = vld [vmem:[%s2832_s15 + $0x20] sm:$0xff]  ;;  %v477_v32 = vsub.s32 0, %v2852_v29 }
  0x20   : > { %v517_v1 = vld [vmem:[%s2832_s15 + $0x28] sm:$0xff]  ;;  %v518_v2 = vld [vmem:[%s2832_s15 + $0x30] sm:$0xff]  ;;  %v519_v3 = vld [vmem:[%s2832_s15 + $0x38] sm:$0xff] }
  0x21   : > { %v520_v4 = vld [vmem:[%s2832_s15 + $0x40] sm:$0xff]  ;;  %v521_v5 = vld [vmem:[%s2832_s15 + $0x48] sm:$0xff]  ;;  %v522_v6 = vld [vmem:[%s2832_s15 + $0x50] sm:$0xff] }
  0x22   : > { %v523_v11 = vld [vmem:[%s2832_s15 + $0x58] sm:$0xff]  ;;  %v524_v12 = vld [vmem:[%s2832_s15 + $0x60] sm:$0xff]  ;;  %v525_v25 = vld [vmem:[%s2832_s15 + $0x68] sm:$0xff] }
  0x23   : > { %417 = vperm.xlu0 %2535, %v303_v34   ;;  %422 = vperm.xlu1 %2536, %v304_v35   ;;  %v526_v26 = vld [vmem:[%s2832_s15 + $0x70] sm:$0xff]  ;;  %v527_v27 = vld [vmem:[%s2832_s15 + $0x78] sm:$0xff]  ;;  %v2537_v30 = vld [vmem:[%s3169_s3] sm:$0xff]  }
  0x24   : > { %v2538_v31 = vld [vmem:[%s3169_s3 + $0x8] sm:$0xff]   ;;  %2313 = vmatprep.subr.bf16.mxu1 %v2537_v30  ;;  %v2539_v35 = vld [vmem:[%s3169_s3 + $0x10] sm:$0xff]  }
  0x25   : > { %2314 = vmatpush3.bf16.msra.mxu1 %v2537_v30 }
  0x26   : > { %2315 = vmatprep.subr.bf16.mxu1 %v2538_v31 }
  0x27   : > { %337 = vperm.xlu0 %2535, %v287_v36   ;;  %342 = vperm.xlu1 %2536, %v288_v37   ;;  %v2865_v36 = vrot.slane %v2685_v0, %v477_v32 }
  0x29   : > { %2316 = vmatpush3.bf16.msra.mxu1 %v2538_v31 }
  0x2a   : > { %2317 = vmatprep.subr.bf16.mxu1 %v2539_v35 }
  0x2b   : > { %427 = vperm.xlu0 %2535, %v305_v38   ;;  %432 = vperm.xlu1 %2536, %v306_v39  }
  0x2d   : > { %2318 = vmatpush3.bf16.msra.mxu1 %v2539_v35 }
  0x2f   : > { %347 = vperm.xlu0 %2535, %v289_v40   ;;  %352 = vperm.xlu1 %2536, %v290_v41  }
  0x33   : > { %437 = vperm.xlu0 %2535, %v307_v42   ;;  %442 = vperm.xlu1 %2536, %v308_v43  }
  0x37   : > { %357 = vperm.xlu0 %2535, %v291_v44   ;;  %362 = vperm.xlu1 %2536, %v292_v45  }
  0x3b   : > { %447 = vperm.xlu0 %2535, %v309_v46   ;;  %452 = vperm.xlu1 %2536, %v310_v47  }
  0x3f   : > { %367 = vperm.xlu0 %2535, %v293_v48   ;;  %372 = vperm.xlu1 %2536, %v294_v49  }
  0x43   : > { %457 = vperm.xlu0 %2535, %v311_v50   ;;  %462 = vperm.xlu1 %2536, %v312_v51  }
  0x47   : > { %377 = vperm.xlu0 %2535, %v295_v52   ;;  %382 = vperm.xlu1 %2536, %v296_v53  }
  0x4b   : > { %467 = vperm.xlu0 %2535, %v313_v54   ;;  %472 = vperm.xlu1 %2536, %v314_v55  }
  0x4f   : > { %387 = vperm.xlu0 %2535, %v297_v56   ;;  %392 = vperm.xlu1 %2536, %v298_v57  }
  0x53   : > { %530 = vperm.xlu0 %2535, %v512_v58   ;;  %535 = vperm.xlu1 %2536, %v513_v59  }
  0x57   : > { %540 = vperm.xlu0 %2535, %v514_v61   ;;  %545 = vperm.xlu1 %2536, %v515_v62  }
  0x5b   : > { %550 = vperm.xlu0 %2535, %v516_v63   ;;  %555 = vperm.xlu1 %2536, %v517_v1  }
  0x5f   : > { %560 = vperm.xlu0 %2535, %v518_v2   ;;  %565 = vperm.xlu1 %2536, %v519_v3  }
  0x63   : > { %570 = vperm.xlu0 %2535, %v520_v4   ;;  %575 = vperm.xlu1 %2536, %v521_v5  }
  0x67   : > { %580 = vperm.xlu0 %2535, %v522_v6   ;;  %585 = vperm.xlu1 %2536, %v523_v11  }
  0x6b   : > { %590 = vperm.xlu0 %2535, %v524_v12   ;;  %595 = vperm.xlu1 %2536, %v525_v25  }
  0x6f   : > { %600 = vperm.xlu0 %2535, %v526_v26   ;;  %605 = vperm.xlu1 %2536, %v527_v27  }
  0x92   : > { %v398_v33 = vpop.permute.xlu0 %397  ;;  %v318_v34 = vpop.permute.xlu1 %317 }
  0x93   : > { %v495_v39 = vmul.f32 %v2865_v36, %v398_v33  ;;  %v479_v40 = vmul.f32 %v2865_v36, %v318_v34 }
  0x96   : > { %v403_v37 = vpop.permute.xlu0 %402  ;;  %v323_v38 = vpop.permute.xlu1 %322 }
  0x97   : > { %v496_v41 = vmul.f32 %v2865_v36, %v403_v37  ;;  %v480_v42 = vmul.f32 %v2865_v36, %v323_v38 }
  0x99   : > { %v632_v43 = vpack.c.bf16 %v496_v41, %v495_v39  ;;  %v624_v44 = vpack.c.bf16 %v480_v42, %v479_v40 }
  0x9a   : > { %v408_v45 = vpop.permute.xlu0 %407  ;;  %v413_v46 = vpop.permute.xlu1 %412 }
  0x9b   : > { %v497_v47 = vmul.f32 %v2865_v36, %v408_v45  ;;  %v498_v48 = vmul.f32 %v2865_v36, %v413_v46  ;;  %2111 = vmatprep.subr.bf16.mxu0 %v632_v43 }
  0x9c   : > { %2112 = vmatpush3.bf16.msra.mxu0 %v624_v44 }
  0x9d   : > { %v633_v49 = vpack.c.bf16 %v498_v48, %v497_v47 }
  0x9e   : > { %v328_v50 = vpop.permute.xlu0 %327  ;;  %v333_v51 = vpop.permute.xlu1 %332 }
  0x9f   : > { %v481_v52 = vmul.f32 %v2865_v36, %v328_v50  ;;  %v482_v53 = vmul.f32 %v2865_v36, %v333_v51  ;;  %2113 = vmatprep.subr.bf16.mxu0 %v633_v49 }
  0xa1   : > { %v625_v54 = vpack.c.bf16 %v482_v53, %v481_v52 }
  0xa2   : > { %v418_v55 = vpop.permute.xlu0 %417  ;;  %v423_v56 = vpop.permute.xlu1 %422 }
  0xa3   : > { %v499_v57 = vmul.f32 %v2865_v36, %v418_v55  ;;  %v500_v58 = vmul.f32 %v2865_v36, %v423_v56  ;;  %2114 = vmatpush3.bf16.msra.mxu0 %v625_v54 }
  0xa5   : > { %v634_v59 = vpack.c.bf16 %v500_v58, %v499_v57 }
  0xa6   : > { %v338_v60 = vpop.permute.xlu0 %337  ;;  %v343_v61 = vpop.permute.xlu1 %342 }
  0xa7   : > { %v483_v62 = vmul.f32 %v2865_v36, %v338_v60  ;;  %v484_v63 = vmul.f32 %v2865_v36, %v343_v61  ;;  %2115 = vmatprep.subr.bf16.mxu0 %v634_v59 }
  0xa9   : > { %v626_v1 = vpack.c.bf16 %v484_v63, %v483_v62 }
  0xaa   : > { %v428_v2 = vpop.permute.xlu0 %427  ;;  %v433_v3 = vpop.permute.xlu1 %432 }
  0xab   : > { %v501_v4 = vmul.f32 %v2865_v36, %v428_v2  ;;  %v502_v5 = vmul.f32 %v2865_v36, %v433_v3  ;;  %2116 = vmatpush3.bf16.msra.mxu0 %v626_v1 }
  0xad   : > { %v635_v6 = vpack.c.bf16 %v502_v5, %v501_v4 }
  0xae   : > { %v348_v11 = vpop.permute.xlu0 %347  ;;  %v353_v12 = vpop.permute.xlu1 %352 }
  0xaf   : > { %v485_v25 = vmul.f32 %v2865_v36, %v348_v11  ;;  %v486_v26 = vmul.f32 %v2865_v36, %v353_v12  ;;  %2117 = vmatprep.subr.bf16.mxu0 %v635_v6  ;;  %v1993_v11 = vcombine.low %v2699_v7, %v2701_v8  ;;  %v1996_v12 = vcombine.high %v2703_v9, %v2705_v10 }
  0xb1   : > { %v627_v27 = vpack.c.bf16 %v486_v26, %v485_v25  ;;  %v1995_v25 = vcombine.low %v2703_v9, %v2705_v10  ;;  %v1998_v26 = vcombine.high %v2707_v13, %v2709_v14 }
  0xb2   : > { %v438_v28 = vpop.permute.xlu0 %437  ;;  %v443_v30 = vpop.permute.xlu1 %442 }
  0xb3   : > { %v503_v31 = vmul.f32 %v2865_v36, %v438_v28  ;;  %v504_v32 = vmul.f32 %v2865_v36, %v443_v30  ;;  %2118 = vmatpush3.bf16.msra.mxu0 %v627_v27  ;;  %v1997_v27 = vcombine.low %v2707_v13, %v2709_v14  ;;  %v2000_v28 = vcombine.high %v2711_v15, %v2713_v16 }
  0xb4   : > { %v1999_v30 = vcombine.low %v2711_v15, %v2713_v16 }
  0xb5   : > { %v636_v33 = vpack.c.bf16 %v504_v32, %v503_v31  ;;  %v2002_v31 = vcombine.high %v2715_v17, %v2717_v18  ;;  %v2001_v32 = vcombine.low %v2715_v17, %v2717_v18 }
  0xb6   : > { %v358_v34 = vpop.permute.xlu0 %357  ;;  %v363_v35 = vpop.permute.xlu1 %362 }
  0xb7   : > { %v487_v37 = vmul.f32 %v2865_v36, %v358_v34  ;;  %v488_v38 = vmul.f32 %v2865_v36, %v363_v35  ;;  %2119 = vmatprep.subr.bf16.mxu0 %v636_v33  ;;  %v2004_v33 = vcombine.high %v2719_v19, %v2721_v20  ;;  %v2003_v34 = vcombine.low %v2719_v19, %v2721_v20 }
  0xb8   : > { %v2006_v35 = vcombine.high %v2723_v21, %v2725_v22 }
  0xb9   : > { %v628_v39 = vpack.c.bf16 %v488_v38, %v487_v37  ;;  %v2005_v37 = vcombine.low %v2723_v21, %v2725_v22  ;;  %v2008_v38 = vcombine.high %v2727_v23, %v2729_v24 }
  0xba   : > { %v448_v40 = vpop.permute.xlu0 %447  ;;  %v453_v41 = vpop.permute.xlu1 %452 }
  0xbb   : > { %v505_v42 = vmul.f32 %v2865_v36, %v448_v40  ;;  %v506_v43 = vmul.f32 %v2865_v36, %v453_v41  ;;  %2120 = vmatpush3.bf16.msra.mxu0 %v628_v39  ;;  %v2007_v39 = vcombine.low %v2727_v23, %v2729_v24  ;;  %v2540_v40 = vld [vmem:[%s3169_s3 + $0x18] sm:$0xff]   ;;  %v2541_v41 = vld [vmem:[%s3169_s3 + $0x20] sm:$0xff]  }
  0xbc   : > { %2319 = vmatprep.subr.bf16.mxu1 %v2540_v40 }
  0xbd   : > { %v637_v44 = vpack.c.bf16 %v506_v43, %v505_v42  ;;  %2320 = vmatpush3.bf16.msra.mxu1 %v2540_v40  ;;  %v2542_v42 = vld [vmem:[%s3169_s3 + $0x28] sm:$0xff]   ;;  %v2543_v43 = vld [vmem:[%s3169_s3 + $0x30] sm:$0xff]  }
  0xbe   : > { %v368_v45 = vpop.permute.xlu0 %367  ;;  %v373_v46 = vpop.permute.xlu1 %372  ;;  %2321 = vmatprep.subr.bf16.mxu1 %v2541_v41 }
  0xbf   : > { %v489_v47 = vmul.f32 %v2865_v36, %v368_v45  ;;  %v490_v48 = vmul.f32 %v2865_v36, %v373_v46  ;;  %2121 = vmatprep.subr.bf16.mxu0 %v637_v44  ;;  %v2544_v44 = vld [vmem:[%s3169_s3 + $0x38] sm:$0xff]   ;;  %v835_v45 = vsub.s32 1, %v2852_v29 }
  0xc1   : > { %v629_v49 = vpack.c.bf16 %v490_v48, %v489_v47  ;;  %2322 = vmatpush3.bf16.msra.mxu1 %v2541_v41 }
  0xc2   : > { %v458_v50 = vpop.permute.xlu0 %457  ;;  %v463_v51 = vpop.permute.xlu1 %462  ;;  %2323 = vmatprep.subr.bf16.mxu1 %v2542_v42 }
  0xc3   : > { %v507_v52 = vmul.f32 %v2865_v36, %v458_v50  ;;  %v508_v53 = vmul.f32 %v2865_v36, %v463_v51  ;;  %2122 = vmatpush3.bf16.msra.mxu0 %v629_v49 }
  0xc5   : > { %v638_v54 = vpack.c.bf16 %v508_v53, %v507_v52  ;;  %2324 = vmatpush3.bf16.msra.mxu1 %v2542_v42  ;;  %v2947_v53 = vrot.slane %v2685_v0, %v835_v45 }
  0xc6   : > { %v378_v55 = vpop.permute.xlu0 %377  ;;  %v383_v56 = vpop.permute.xlu1 %382  ;;  %2325 = vmatprep.subr.bf16.mxu1 %v2543_v43 }
  0xc7   : > { %v491_v57 = vmul.f32 %v2865_v36, %v378_v55  ;;  %v492_v58 = vmul.f32 %v2865_v36, %v383_v56  ;;  %2123 = vmatprep.subr.bf16.mxu0 %v638_v54 }
  0xc9   : > { %v630_v59 = vpack.c.bf16 %v492_v58, %v491_v57  ;;  %2326 = vmatpush3.bf16.msra.mxu1 %v2543_v43 }
  0xca   : > { %v468_v60 = vpop.permute.xlu0 %467  ;;  %v473_v61 = vpop.permute.xlu1 %472  ;;  %2327 = vmatprep.subr.bf16.mxu1 %v2544_v44 }
  0xcb   : > { %v509_v62 = vmul.f32 %v2865_v36, %v468_v60  ;;  %v510_v63 = vmul.f32 %v2865_v36, %v473_v61  ;;  %2124 = vmatpush3.bf16.msra.mxu0 %v630_v59 }
  0xcd   : > { %v639_v1 = vpack.c.bf16 %v510_v63, %v509_v62  ;;  %2328 = vmatpush3.bf16.msra.mxu1 %v2544_v44 }
  0xce   : > { %v388_v2 = vpop.permute.xlu0 %387  ;;  %v393_v3 = vpop.permute.xlu1 %392 }
  0xcf   : > { %v493_v4 = vmul.f32 %v2865_v36, %v388_v2  ;;  %v494_v5 = vmul.f32 %v2865_v36, %v393_v3  ;;  %2125 = vmatprep.subr.bf16.mxu0 %v639_v1 }
  0xd1   : > { %v631_v6 = vpack.c.bf16 %v494_v5, %v493_v4 }
  0xd2   : > { %v531_v46 = vpop.permute.xlu0 %530  ;;  %v536_v48 = vpop.permute.xlu1 %535 }
  0xd3   : > { %2126 = vmatpush3.bf16.msra.mxu0 %v631_v6  ;;  %v608_v50 = vmul.f32 %v531_v46, %v2865_v36  ;;  %v609_v55 = vmul.f32 %v536_v48, %v2865_v36 }
  0xd6   : > { %753 = vmatmul.mubr.bf16.vlgmr.msra.gmra.mrb[0].mxu0 %v1993_v11  ;;  %v541_v60 = vpop.permute.xlu0 %540  ;;  %v546_v63 = vpop.permute.xlu1 %545 }
  0xd7   : > { %760 = vmatprep.mubr.bf16.mxu0 %v1996_v12  ;;  %v610_v2 = vmul.f32 %v541_v60, %v2865_v36  ;;  %v611_v12 = vmul.f32 %v546_v63, %v2865_v36 }
  0xde   : > { %761 = vmatmul.mubr.bf16.gmra.mrb[4].mxu0 %v1995_v25 }
  0xdf   : > { %768 = vmatprep.mubr.bf16.mxu0 %v1998_v26 }
  0xe6   : > { %769 = vmatmul.mubr.bf16.gmra.mrb[8].mxu0 %v1997_v27 }
  0xe7   : > { %776 = vmatprep.mubr.bf16.mxu0 %v2000_v28 }
  0xee   : > { %777 = vmatmul.mubr.bf16.gmra.mrb[12].mxu0 %v1999_v30 }
  0xef   : > { %784 = vmatprep.mubr.bf16.mxu0 %v2002_v31  ;;  %v551_v31 = vpop.permute.xlu0 %550 }
  0xf6   : > { %785 = vmatmul.mubr.bf16.gmra.mrb[16].mxu0 %v2001_v32 }
  0xf7   : > { %792 = vmatprep.mubr.bf16.mxu0 %v2004_v33 }
  0xfe   : > { %793 = vmatmul.mubr.bf16.gmra.mrb[20].mxu0 %v2003_v34  ;;  %v556_v34 = vpop.permute.xlu1 %555 }
  0xff   : > { %800 = vmatprep.mubr.bf16.mxu0 %v2006_v35  ;;  %v613_v43 = vmul.f32 %v556_v34, %v2865_v36 }
 0x106   : > { %801 = vmatmul.mubr.bf16.gmra.mrb[24].mxu0 %v2005_v37  ;;  %v612_v37 = vmul.f32 %v551_v31, %v2865_v36 }
 0x107   : > { %808 = vmatprep.mubr.bf16.mxu0 %v2008_v38 }
 0x10e   : > { %809 = vmatmul.mubr.bf16.gmra.mrb[28].mxu0 %v2007_v39 }
 0x1a9   : > { %v2127_v47 = vpop.f32.mrb[0].mxu0 }
 0x1aa   : > { %v2128_v49 = vpop.f32.mrb[1].mxu0 }
 0x1ab   : > { %v2129_v51 = vadd.f32 %v2128_v49, %v2127_v47  ;;  %v2130_v52 = vpop.f32.mrb[2].mxu0  ;;  %v561_v49 = vpop.permute.xlu0 %560 }
 0x1ac   : > { %v2131_v54 = vpop.f32.mrb[3].mxu0 }
 0x1ad   : > { %v817_v56 = vadd.f32 %v2129_v51, %v608_v50  ;;  %v2132_v57 = vadd.f32 %v2131_v54, %v2130_v52  ;;  %v566_v52 = vpop.permute.xlu1 %565 }
 0x1af   : > { %v818_v58 = vadd.f32 %v2132_v57, %v609_v55  ;;  %v837_v59 = vadd.f32 %v2947_v53, %v817_v56  ;;  %v614_v55 = vmul.f32 %v561_v49, %v2865_v36 }
 0x1b1   : > { %v2133_v61 = vpop.f32.mrb[4].mxu0  ;;  %v838_v62 = vadd.f32 %v2947_v53, %v818_v58  ;;  %v853_v5 = vmax.f32 %v837_v59, 0.0 }
 0x1b2   : > { %v2134_v1 = vpop.f32.mrb[5].mxu0 }
 0x1b3   : > { %v2135_v3 = vadd.f32 %v2134_v1, %v2133_v61  ;;  %v2136_v4 = vpop.f32.mrb[6].mxu0  ;;  %v854_v6 = vmax.f32 %v838_v62, 0.0  ;;  %v615_v61 = vmul.f32 %v566_v52, %v2865_v36 }
 0x1b4   : > { %v2137_v11 = vpop.f32.mrb[7].mxu0 }
 0x1b5   : > { %v819_v25 = vadd.f32 %v2135_v3, %v610_v2  ;;  %v2138_v26 = vadd.f32 %v2137_v11, %v2136_v4  ;;  %v869_v27 = vpack.c.bf16 %v854_v6, %v853_v5  ;;  %v571_v4 = vpop.permute.xlu0 %570  ;;  %v576_v11 = vpop.permute.xlu1 %575 }
 0x1b7   : > { %v839_v28 = vadd.f32 %v2947_v53, %v819_v25  ;;  %v820_v30 = vadd.f32 %v2138_v26, %v611_v12  ;;  %2329 = vmatprep.mubr.bf16.mxu1 %v869_v27  ;;  %v616_v25 = vmul.f32 %v571_v4, %v2865_v36 }
 0x1b9   : > { %v840_v32 = vadd.f32 %v2947_v53, %v820_v30  ;;  %v2139_v33 = vpop.f32.mrb[8].mxu0  ;;  %v855_v38 = vmax.f32 %v839_v28, 0.0 }
 0x1ba   : > { %v2140_v35 = vpop.f32.mrb[9].mxu0 }
 0x1bb   : > { %v856_v39 = vmax.f32 %v840_v32, 0.0  ;;  %v2141_v40 = vadd.f32 %v2140_v35, %v2139_v33  ;;  %v2142_v41 = vpop.f32.mrb[10].mxu0  ;;  %v617_v32 = vmul.f32 %v576_v11, %v2865_v36 }
 0x1bc   : > { %v2143_v42 = vpop.f32.mrb[11].mxu0 }
 0x1bd   : > { %v821_v44 = vadd.f32 %v2141_v40, %v612_v37  ;;  %v2144_v45 = vadd.f32 %v2143_v42, %v2142_v41  ;;  %v870_v46 = vpack.c.bf16 %v856_v39, %v855_v38  ;;  %v581_v39 = vpop.permute.xlu0 %580  ;;  %v586_v42 = vpop.permute.xlu1 %585 }
 0x1bf   : > { %v841_v47 = vadd.f32 %v2947_v53, %v821_v44  ;;  %v822_v48 = vadd.f32 %v2144_v45, %v613_v43  ;;  %2330 = vmatmul.mubr.bf16.vlgmr.msra.gmra.mrb[0].mxu1 %v870_v46  ;;  %v618_v44 = vmul.f32 %v581_v39, %v2865_v36 }
 0x1c1   : > { %v842_v50 = vadd.f32 %v2947_v53, %v822_v48  ;;  %v2145_v51 = vpop.f32.mrb[12].mxu0  ;;  %v857_v56 = vmax.f32 %v841_v47, 0.0 }
 0x1c2   : > { %v2146_v54 = vpop.f32.mrb[13].mxu0 }
 0x1c3   : > { %v858_v57 = vmax.f32 %v842_v50, 0.0  ;;  %v2147_v58 = vadd.f32 %v2146_v54, %v2145_v51  ;;  %v2148_v59 = vpop.f32.mrb[14].mxu0  ;;  %v619_v50 = vmul.f32 %v586_v42, %v2865_v36 }
 0x1c4   : > { %v2149_v60 = vpop.f32.mrb[15].mxu0 }
 0x1c5   : > { %v823_v62 = vadd.f32 %v2147_v58, %v614_v55  ;;  %v2150_v63 = vadd.f32 %v2149_v60, %v2148_v59  ;;  %v871_v1 = vpack.c.bf16 %v858_v57, %v857_v56  ;;  %v591_v57 = vpop.permute.xlu0 %590  ;;  %v596_v60 = vpop.permute.xlu1 %595 }
 0x1c7   : > { %v843_v2 = vadd.f32 %v2947_v53, %v823_v62  ;;  %v824_v3 = vadd.f32 %v2150_v63, %v615_v61  ;;  %2333 = vmatprep.mubr.bf16.mxu1 %v871_v1  ;;  %v620_v62 = vmul.f32 %v591_v57, %v2865_v36 }
 0x1c9   : > { %v844_v5 = vadd.f32 %v2947_v53, %v824_v3  ;;  %v2151_v6 = vpop.f32.mrb[16].mxu0  ;;  %v859_v26 = vmax.f32 %v843_v2, 0.0 }
 0x1ca   : > { %v2152_v12 = vpop.f32.mrb[17].mxu0 }
 0x1cb   : > { %v860_v27 = vmax.f32 %v844_v5, 0.0  ;;  %v2153_v28 = vadd.f32 %v2152_v12, %v2151_v6  ;;  %v2154_v30 = vpop.f32.mrb[18].mxu0  ;;  %v621_v5 = vmul.f32 %v596_v60, %v2865_v36 }
 0x1cc   : > { %v2155_v31 = vpop.f32.mrb[19].mxu0 }
 0x1cd   : > { %v825_v33 = vadd.f32 %v2153_v28, %v616_v25  ;;  %v2156_v34 = vadd.f32 %v2155_v31, %v2154_v30  ;;  %v872_v35 = vpack.c.bf16 %v860_v27, %v859_v26  ;;  %v601_v27 = vpop.permute.xlu0 %600  ;;  %v606_v31 = vpop.permute.xlu1 %605 }
 0x1cf   : > { %v845_v37 = vadd.f32 %v2947_v53, %v825_v33  ;;  %v826_v38 = vadd.f32 %v2156_v34, %v617_v32  ;;  %2334 = vmatmul.mubr.bf16.gmra.mrb[4].mxu1 %v872_v35  ;;  %v622_v33 = vmul.f32 %v601_v27, %v2865_v36 }
 0x1d1   : > { %v846_v40 = vadd.f32 %v2947_v53, %v826_v38  ;;  %v2157_v41 = vpop.f32.mrb[20].mxu0  ;;  %v861_v45 = vmax.f32 %v845_v37, 0.0 }
 0x1d2   : > { %v2158_v43 = vpop.f32.mrb[21].mxu0 }
 0x1d3   : > { %v862_v46 = vmax.f32 %v846_v40, 0.0  ;;  %v2159_v47 = vadd.f32 %v2158_v43, %v2157_v41  ;;  %v2160_v48 = vpop.f32.mrb[22].mxu0  ;;  %v623_v40 = vmul.f32 %v606_v31, %v2865_v36 }
 0x1d4   : > { %v2161_v49 = vpop.f32.mrb[23].mxu0 }
 0x1d5   : > { %v827_v51 = vadd.f32 %v2159_v47, %v618_v44  ;;  %v2162_v52 = vadd.f32 %v2161_v49, %v2160_v48  ;;  %v873_v54 = vpack.c.bf16 %v862_v46, %v861_v45 }
 0x1d7   : > { %v847_v55 = vadd.f32 %v2947_v53, %v827_v51  ;;  %v828_v56 = vadd.f32 %v2162_v52, %v619_v50  ;;  %2337 = vmatprep.mubr.bf16.mxu1 %v873_v54  ;;  %v895_v50 = vsub.s32 2, %v2852_v29 }
 0x1d9   : > { %v848_v58 = vadd.f32 %v2947_v53, %v828_v56  ;;  %v2163_v59 = vpop.f32.mrb[24].mxu0  ;;  %v863_v63 = vmax.f32 %v847_v55, 0.0  ;;  %v896_v51 = vrot.slane %v2685_v0, %v895_v50 }
 0x1da   : > { %v2164_v61 = vpop.f32.mrb[25].mxu0 }
 0x1db   : > { %v864_v1 = vmax.f32 %v848_v58, 0.0  ;;  %v2165_v2 = vadd.f32 %v2164_v61, %v2163_v59  ;;  %v2166_v3 = vpop.f32.mrb[26].mxu0 }
 0x1dc   : > { %v2167_v4 = vpop.f32.mrb[27].mxu0 }
 0x1dd   : > { %v829_v6 = vadd.f32 %v2165_v2, %v620_v62  ;;  %v2168_v11 = vadd.f32 %v2167_v4, %v2166_v3  ;;  %v874_v12 = vpack.c.bf16 %v864_v1, %v863_v63 }
 0x1df   : > { %v849_v25 = vadd.f32 %v2947_v53, %v829_v6  ;;  %v830_v26 = vadd.f32 %v2168_v11, %v621_v5  ;;  %2338 = vmatmul.mubr.bf16.gmra.mrb[8].mxu1 %v874_v12 }
 0x1e1   : > { %v850_v28 = vadd.f32 %v2947_v53, %v830_v26  ;;  %v2169_v30 = vpop.f32.mrb[28].mxu0  ;;  %v865_v34 = vmax.f32 %v849_v25, 0.0 }
 0x1e2   : > { %v2170_v32 = vpop.f32.mrb[29].mxu0 }
 0x1e3   : > { %v866_v35 = vmax.f32 %v850_v28, 0.0  ;;  %v2171_v37 = vadd.f32 %v2170_v32, %v2169_v30  ;;  %v2172_v38 = vpop.f32.mrb[30].mxu0 }
 0x1e4   : > { %v2173_v39 = vpop.f32.mrb[31].mxu0 }
 0x1e5   : > { %v831_v41 = vadd.f32 %v2171_v37, %v622_v33  ;;  %v2174_v42 = vadd.f32 %v2173_v39, %v2172_v38  ;;  %v875_v43 = vpack.c.bf16 %v866_v35, %v865_v34 }
 0x1e7   : > { %v851_v44 = vadd.f32 %v2947_v53, %v831_v41  ;;  %v832_v45 = vadd.f32 %v2174_v42, %v623_v40  ;;  %2341 = vmatprep.mubr.bf16.mxu1 %v875_v43 }
 0x1e9   : > { %v852_v46 = vadd.f32 %v2947_v53, %v832_v45  ;;  %v867_v47 = vmax.f32 %v851_v44, 0.0 }
 0x1eb   : > { %v868_v48 = vmax.f32 %v852_v46, 0.0 }
 0x1ed   : > { %v876_v49 = vpack.c.bf16 %v868_v48, %v867_v47 }
 0x1ef   : > { %2342 = vmatmul.mubr.bf16.gmra.mrb[12].mxu1 %v876_v49 }
 0x292   : > { %v2331_v52 = vpop.f32.mrb[0].mxu1 }
 0x293   : > { %v988_v36 = vadd.f32 %v2331_v52, %v896_v51  ;;  %v979_v54 = vpop.f32.mrb[1].mxu1 }
 0x294   : > { %v980_v55 = vadd.f32 %v979_v54, %v896_v51  ;;  %v2332_v56 = vpop.f32.mrb[2].mxu1 }
 0x295   : > { %v1044_v57 = vmax.f32 %v988_v36, 0.0  ;;  %v991_v58 = vadd.f32 %v2332_v56, %v896_v51  ;;  %v982_v59 = vpop.f32.mrb[3].mxu1 }
 0x296   : > { %v1042_v60 = vmax.f32 %v980_v55, 0.0  ;;  %v983_v61 = vadd.f32 %v982_v59, %v896_v51 }
 0x297   : > { %1061 = vst [vmem:[%s2983_s16 + $0x10] sm:$0xff] %v1044_v57  ;;  %v1045_v29 = vmax.f32 %v991_v58, 0.0 }
 0x298   : > { %1059 = vst [vmem:[%s2983_s16] sm:$0xff] %v1042_v60  ;;  %v1043_v53 = vmax.f32 %v983_v61, 0.0 }
 0x299   : > { %1062 = vst [vmem:[%s2983_s16 + $0x18] sm:$0xff] %v1045_v29 }
 0x29a   : > { %1060 = vst [vmem:[%s2983_s16 + $0x8] sm:$0xff] %v1043_v53 }
 0x2a2   : > { %v2335_v62 = vpop.f32.mrb[4].mxu1 }
 0x2a3   : > { %v1004_v63 = vadd.f32 %v2335_v62, %v896_v51  ;;  %v995_v1 = vpop.f32.mrb[5].mxu1 }
 0x2a4   : > { %v996_v2 = vadd.f32 %v995_v1, %v896_v51  ;;  %v2336_v3 = vpop.f32.mrb[6].mxu1 }
 0x2a5   : > { %v1048_v4 = vmax.f32 %v1004_v63, 0.0  ;;  %v1007_v5 = vadd.f32 %v2336_v3, %v896_v51  ;;  %v998_v6 = vpop.f32.mrb[7].mxu1 }
 0x2a6   : > { %v1046_v11 = vmax.f32 %v996_v2, 0.0  ;;  %v999_v12 = vadd.f32 %v998_v6, %v896_v51 }
 0x2a7   : > { %1065 = vst [vmem:[%s2983_s16 + $0x30] sm:$0xff] %v1048_v4  ;;  %v1049_v25 = vmax.f32 %v1007_v5, 0.0 }
 0x2a8   : > { %1063 = vst [vmem:[%s2983_s16 + $0x20] sm:$0xff] %v1046_v11  ;;  %v1047_v26 = vmax.f32 %v999_v12, 0.0 }
 0x2a9   : > { %1066 = vst [vmem:[%s2983_s16 + $0x38] sm:$0xff] %v1049_v25 }
 0x2aa   : > { %1064 = vst [vmem:[%s2983_s16 + $0x28] sm:$0xff] %v1047_v26 }
 0x2b2   : > { %v2339_v27 = vpop.f32.mrb[8].mxu1 }
 0x2b3   : > { %v1020_v28 = vadd.f32 %v2339_v27, %v896_v51  ;;  %v1011_v30 = vpop.f32.mrb[9].mxu1 }
 0x2b4   : > { %v1012_v31 = vadd.f32 %v1011_v30, %v896_v51  ;;  %v2340_v32 = vpop.f32.mrb[10].mxu1 }
 0x2b5   : > { %v1052_v33 = vmax.f32 %v1020_v28, 0.0  ;;  %v1023_v34 = vadd.f32 %v2340_v32, %v896_v51  ;;  %v1014_v35 = vpop.f32.mrb[11].mxu1 }
 0x2b6   : > { %v1050_v37 = vmax.f32 %v1012_v31, 0.0  ;;  %v1015_v38 = vadd.f32 %v1014_v35, %v896_v51 }
 0x2b7   : > { %1069 = vst [vmem:[%s2983_s16 + $0x50] sm:$0xff] %v1052_v33  ;;  %v1053_v39 = vmax.f32 %v1023_v34, 0.0 }
 0x2b8   : > { %1067 = vst [vmem:[%s2983_s16 + $0x40] sm:$0xff] %v1050_v37  ;;  %v1051_v40 = vmax.f32 %v1015_v38, 0.0 }
 0x2b9   : > { %1070 = vst [vmem:[%s2983_s16 + $0x58] sm:$0xff] %v1053_v39 }
 0x2ba   : > { %1068 = vst [vmem:[%s2983_s16 + $0x48] sm:$0xff] %v1051_v40 }
 0x2c2   : > { %v2343_v41 = vpop.f32.mrb[12].mxu1 }
 0x2c3   : > { %v1036_v42 = vadd.f32 %v2343_v41, %v896_v51  ;;  %v1027_v43 = vpop.f32.mrb[13].mxu1 }
 0x2c4   : > { %v1028_v44 = vadd.f32 %v1027_v43, %v896_v51  ;;  %v2344_v45 = vpop.f32.mrb[14].mxu1 }
 0x2c5   : > { %v1056_v46 = vmax.f32 %v1036_v42, 0.0  ;;  %v1039_v47 = vadd.f32 %v2344_v45, %v896_v51  ;;  %v1030_v48 = vpop.f32.mrb[15].mxu1 }
 0x2c6   : > { %v1054_v49 = vmax.f32 %v1028_v44, 0.0  ;;  %v1031_v50 = vadd.f32 %v1030_v48, %v896_v51 }
 0x2c7   : > { %1073 = vst [vmem:[%s2983_s16 + $0x70] sm:$0xff] %v1056_v46  ;;  %v1057_v52 = vmax.f32 %v1039_v47, 0.0 }
 0x2c8   : > { %1071 = vst [vmem:[%s2983_s16 + $0x60] sm:$0xff] %v1054_v49  ;;  %v1055_v36 = vmax.f32 %v1031_v50, 0.0 }
 0x2c9   : > { %1074 = vst [vmem:[%s2983_s16 + $0x78] sm:$0xff] %v1057_v52 }
 0x2ca   : > { %1072 = vst [vmem:[%s2983_s16 + $0x68] sm:$0xff] %v1055_v36 }
 0x2cb PF: > { %p2017_p8 = scmp.ne.s32.totalorder %s2595_s19, 1 }
 0x2cc   : > { %p2018_p9 = scmp.ne.s32.totalorder (!%p2017_p8), %s2591_s18, 0 }
 0x2cd   : > { %1078 = sbr.rel (%p2017_p8) target bundleno = 2080 (0x820), region = 48 }
 0x2d4   : > { %1082 = sbr.rel (%p2018_p9) target bundleno = 731 (0x2db), region = 52  ;;  %v2610_v54 = vmov (!%p2018_p9), 0.0  }
 0x2d5   : > { %1083 = vst [vmem:[#allocation3] sm:$0xff] (!%p2018_p9), %v2610_v54 }
 0x2db PF: > { %v1117_v55 = vld [vmem:[#allocation2 + $0x80] sm:$0xff]  ;;  %v1118_v56 = vld [vmem:[#allocation2 + $0x88] sm:$0xff]  ;;  %v2020_v51 = vcombine.high %v2699_v7, %v2701_v8  ;;  %v1119_v60 = vld [vmem:[#allocation2 + $0x90] sm:$0xff]  ;;  %s3063_s17 = scalar_lea.vmem [#allocation2], %s2688_s28  ;;  %vm2612_vm0 = vmmov 0   ;;  %p2083_p10 = scmp.ne.s32.totalorder %s2591_s18, 1 }
 0x2dc   : > { %v1101_v57 = vld [vmem:[#allocation2] sm:$0xff]  ;;  %v1141_v58 = vpack.c.bf16 %v1118_v56, %v1117_v55  ;;  %v1102_v59 = vld [vmem:[#allocation2 + $0x8] sm:$0xff]  ;;  %v1120_v61 = vld [vmem:[#allocation2 + $0x98] sm:$0xff]  ;;  %vm2615_vm1 = vmmov (!%p2083_p10), 0   ;;  %vm1924_vm2 = vcmask (!%p2083_p10), 7168  }
 0x2dd   : > { %v1133_v29 = vpack.c.bf16 %v1102_v59, %v1101_v57  ;;  %v1142_v53 = vpack.c.bf16 %v1120_v61, %v1119_v60  ;;  %v1103_v62 = vld [vmem:[#allocation2 + $0x10] sm:$0xff]  ;;  %v1104_v63 = vld [vmem:[#allocation2 + $0x18] sm:$0xff]  ;;  %v1121_v1 = vld [vmem:[#allocation2 + $0xa0] sm:$0xff]  ;;  %1261 = vmatprep.mubr.bf16.mxu0 %v2020_v51  ;;  %v2019_v60 = vcombine.low %v2699_v7, %v2701_v8  ;;  %v2022_v61 = vcombine.high %v2703_v9, %v2705_v10 }
 0x2de   : > { %2191 = vmatprep.subr.bf16.mxu0 %v1141_v58  ;;  %v1122_v2 = vld [vmem:[#allocation2 + $0xa8] sm:$0xff]  ;;  %v1134_v3 = vpack.c.bf16 %v1104_v63, %v1103_v62  ;;  %v1105_v5 = vld [vmem:[#allocation2 + $0x20] sm:$0xff]  ;;  %v1123_v11 = vld [vmem:[#allocation2 + $0xb0] sm:$0xff]  ;;  %v2023_v62 = vcombine.low %v2707_v13, %v2709_v14  ;;  %v2026_v7 = vcombine.high %v2711_v15, %v2713_v16  ;;  %v2025_v8 = vcombine.low %v2711_v15, %v2713_v16 }
 0x2df   : > { %2192 = vmatpush3.bf16.msra.mxu0 %v1133_v29  ;;  %v1143_v4 = vpack.c.bf16 %v1122_v2, %v1121_v1  ;;  %v1106_v6 = vld [vmem:[#allocation2 + $0x28] sm:$0xff]  ;;  %v1124_v12 = vld [vmem:[#allocation2 + $0xb8] sm:$0xff]  ;;  %v1107_v27 = vld [vmem:[#allocation2 + $0x30] sm:$0xff]  ;;  %v2021_v29 = vcombine.low %v2703_v9, %v2705_v10  ;;  %v2028_v63 = vcombine.high %v2715_v17, %v2717_v18  ;;  %v2027_v9 = vcombine.low %v2715_v17, %v2717_v18 }
 0x2e0   : > { %2193 = vmatprep.subr.bf16.mxu0 %v1142_v53  ;;  %v1135_v25 = vpack.c.bf16 %v1106_v6, %v1105_v5  ;;  %v1144_v26 = vpack.c.bf16 %v1124_v12, %v1123_v11  ;;  %v1108_v28 = vld [vmem:[#allocation2 + $0x38] sm:$0xff]  ;;  %v1125_v30 = vld [vmem:[#allocation2 + $0xc0] sm:$0xff]  ;;  %v1126_v31 = vld [vmem:[#allocation2 + $0xc8] sm:$0xff]  ;;  %v2024_v53 = vcombine.high %v2707_v13, %v2709_v14  ;;  %v2030_v10 = vcombine.high %v2719_v19, %v2721_v20 }
 0x2e1   : > { %v1109_v32 = vld [vmem:[#allocation2 + $0x40] sm:$0xff]  ;;  %v1110_v33 = vld [vmem:[#allocation2 + $0x48] sm:$0xff]  ;;  %v1136_v35 = vpack.c.bf16 %v1108_v28, %v1107_v27  ;;  %v1127_v37 = vld [vmem:[#allocation2 + $0xd0] sm:$0xff]  ;;  %v1145_v39 = vpack.c.bf16 %v1126_v31, %v1125_v30  ;;  %v2029_v13 = vcombine.low %v2719_v19, %v2721_v20  ;;  %v2032_v14 = vcombine.high %v2723_v21, %v2725_v22 }
 0x2e2   : > { %v2545_v34 = vld [vmem:[%s3169_s3 + $0x40] sm:$0xff]   ;;  %v2546_v38 = vld [vmem:[%s3169_s3 + $0x48] sm:$0xff]   ;;  %v1128_v40 = vld [vmem:[#allocation2 + $0xd8] sm:$0xff]  ;;  %v1137_v44 = vpack.c.bf16 %v1110_v33, %v1109_v32  ;;  %v2031_v15 = vcombine.low %v2723_v21, %v2725_v22  ;;  %v2034_v16 = vcombine.high %v2727_v23, %v2729_v24  ;;  %v2033_v17 = vcombine.low %v2727_v23, %v2729_v24 }
 0x2e3   : > { %2194 = vmatpush3.bf16.msra.mxu0 %v1134_v3  ;;  %2345 = vmatprep.subr.bf16.mxu1 %v2545_v34  ;;  %v2547_v41 = vld [vmem:[%s3169_s3 + $0x50] sm:$0xff]   ;;  %v1112_v43 = vld [vmem:[#allocation2 + $0x58] sm:$0xff]  ;;  %v1129_v45 = vld [vmem:[#allocation2 + $0xe0] sm:$0xff]  ;;  %v1146_v47 = vpack.c.bf16 %v1128_v40, %v1127_v37 }
 0x2e4   : > { %2195 = vmatprep.subr.bf16.mxu0 %v1143_v4  ;;  %2346 = vmatpush3.bf16.msra.mxu1 %v2545_v34  ;;  %v1111_v42 = vld [vmem:[#allocation2 + $0x50] sm:$0xff]  ;;  %v1130_v46 = vld [vmem:[#allocation2 + $0xe8] sm:$0xff]  ;;  %v2548_v48 = vld [vmem:[%s3169_s3 + $0x58] sm:$0xff]  }
 0x2e5   : > { %2347 = vmatprep.subr.bf16.mxu1 %v2546_v38  ;;  %v1113_v49 = vld [vmem:[#allocation2 + $0x60] sm:$0xff]  ;;  %v1114_v50 = vld [vmem:[#allocation2 + $0x68] sm:$0xff]  ;;  %v1138_v52 = vpack.c.bf16 %v1112_v43, %v1111_v42  ;;  %v1131_v36 = vld [vmem:[#allocation2 + $0xf0] sm:$0xff]  ;;  %v1147_v54 = vpack.c.bf16 %v1130_v46, %v1129_v45 }
 0x2e6   : > { %v1132_v55 = vld [vmem:[#allocation2 + $0xf8] sm:$0xff]  ;;  %v1139_v56 = vpack.c.bf16 %v1114_v50, %v1113_v49  ;;  %v1115_v51 = vld [vmem:[#allocation2 + $0x70] sm:$0xff]  ;;  %v2549_v18 = vld [vmem:[%s3169_s3 + $0x60] sm:$0xff]  }
 0x2e7   : > { %2196 = vmatpush3.bf16.msra.mxu0 %v1135_v25  ;;  %v1148_v57 = vpack.c.bf16 %v1132_v55, %v1131_v36  ;;  %v1116_v58 = vld [vmem:[#allocation2 + $0x78] sm:$0xff]  ;;  %v2550_v19 = vld [vmem:[%s3169_s3 + $0x68] sm:$0xff]   ;;  %v2551_v20 = vld [vmem:[%s3169_s3 + $0x70] sm:$0xff]  }
 0x2e8   : > { %2197 = vmatprep.subr.bf16.mxu0 %v1144_v26  ;;  %2348 = vmatpush3.bf16.msra.mxu1 %v2546_v38  ;;  %v1140_v59 = vpack.c.bf16 %v1116_v58, %v1115_v51  ;;  %v2552_v21 = vld [vmem:[%s3169_s3 + $0x78] sm:$0xff]   ;;  %v2553_v22 = vld [vmem:[%s3169_s3 + $0x80] sm:$0xff]   ;;  %v1086_v5 = vld [vmem:[%s3063_s17 + $0x8] sm:$0xff] }
 0x2e9   : > { %2349 = vmatprep.subr.bf16.mxu1 %v2547_v41  ;;  %v1085_v4 = vld [vmem:[%s3063_s17] sm:$0xff]  ;;  %v1087_v31 = vld [vmem:[%s3063_s17 + $0x10] sm:$0xff]  ;;  %v1088_v32 = vld [vmem:[%s3063_s17 + $0x18] sm:$0xff] }
 0x2ea   : > { %v2554_v40 = vld [vmem:[%s3169_s3 + $0x88] sm:$0xff]   ;;  %v1091_v51 = vld [vmem:[%s3063_s17 + $0x30] sm:$0xff]  ;;  %v1092_v58 = vld [vmem:[%s3063_s17 + $0x38] sm:$0xff] }
 0x2eb   : > { %2198 = vmatpush3.bf16.msra.mxu0 %v1136_v35  ;;  %v1090_v45 = vld [vmem:[%s3063_s17 + $0x28] sm:$0xff] }
 0x2ec   : > { %2199 = vmatprep.subr.bf16.mxu0 %v1145_v39  ;;  %2350 = vmatpush3.bf16.msra.mxu1 %v2547_v41 }
 0x2ed   : > { %2351 = vmatprep.subr.bf16.mxu1 %v2548_v48 }
 0x2ef   : > { %2200 = vmatpush3.bf16.msra.mxu0 %v1137_v44  ;;  %v1089_v44 = vld [vmem:[%s3063_s17 + $0x20] sm:$0xff] }
 0x2f0   : > { %2201 = vmatprep.subr.bf16.mxu0 %v1146_v47  ;;  %2352 = vmatpush3.bf16.msra.mxu1 %v2548_v48  ;;  %v2555_v48 = vld [vmem:[%s3169_s3 + $0x90] sm:$0xff]  }
 0x2f1   : > { %2353 = vmatprep.subr.bf16.mxu1 %v2549_v18 }
 0x2f3   : > { %2202 = vmatpush3.bf16.msra.mxu0 %v1138_v52 }
 0x2f4   : > { %2203 = vmatprep.subr.bf16.mxu0 %v1147_v54  ;;  %2354 = vmatpush3.bf16.msra.mxu1 %v2549_v18  ;;  %v2556_v54 = vld [vmem:[%s3169_s3 + $0x98] sm:$0xff]  }
 0x2f5   : > { %2355 = vmatprep.subr.bf16.mxu1 %v2550_v19 }
 0x2f7   : > { %2204 = vmatpush3.bf16.msra.mxu0 %v1139_v56 }
 0x2f8   : > { %2205 = vmatprep.subr.bf16.mxu0 %v1148_v57  ;;  %2356 = vmatpush3.bf16.msra.mxu1 %v2550_v19 }
 0x2f9   : > { %2357 = vmatprep.subr.bf16.mxu1 %v2551_v20 }
 0x2fb   : > { %2206 = vmatpush3.bf16.msra.mxu0 %v1140_v59 }
 0x2fc   : > { %2358 = vmatpush3.bf16.msra.mxu1 %v2551_v20 }
 0x2fd   : > { %2359 = vmatprep.subr.bf16.mxu1 %v2552_v21 }
 0x2fe   : > { %1262 = vmatmul.mubr.bf16.vlgmr.msra.gmra.mrb[0].mxu0 %v2019_v60 }
 0x2ff   : > { %1269 = vmatprep.mubr.bf16.mxu0 %v2022_v61  ;;  %v2557_v61 = vld [vmem:[%s3169_s3 + $0xa0] sm:$0xff]  }
 0x300   : > { %2360 = vmatpush3.bf16.msra.mxu1 %v2552_v21 }
 0x301   : > { %2377 = vmatprep.subr.bf16.mxu1 %v2553_v22 }
 0x306   : > { %1270 = vmatmul.mubr.bf16.gmra.mrb[4].mxu0 %v2021_v29 }
 0x307   : > { %1277 = vmatprep.mubr.bf16.mxu0 %v2024_v53 }
 0x30e   : > { %1278 = vmatmul.mubr.bf16.gmra.mrb[8].mxu0 %v2023_v62 }
 0x30f   : > { %1285 = vmatprep.mubr.bf16.mxu0 %v2026_v7 }
 0x316   : > { %1286 = vmatmul.mubr.bf16.gmra.mrb[12].mxu0 %v2025_v8  ;;  %v2558_v8 = vld [vmem:[%s3169_s3 + $0xa8] sm:$0xff]  }
 0x317   : > { %1293 = vmatprep.mubr.bf16.mxu0 %v2028_v63 }
 0x31e   : > { %1294 = vmatmul.mubr.bf16.gmra.mrb[16].mxu0 %v2027_v9 }
 0x31f   : > { %1301 = vmatprep.mubr.bf16.mxu0 %v2030_v10 }
 0x326   : > { %1302 = vmatmul.mubr.bf16.gmra.mrb[20].mxu0 %v2029_v13  ;;  %v1093_v13 = vld [vmem:[%s3063_s17 + $0x40] sm:$0xff] }
 0x327   : > { %1309 = vmatprep.mubr.bf16.mxu0 %v2032_v14  ;;  %v1094_v14 = vld [vmem:[%s3063_s17 + $0x48] sm:$0xff] }
 0x32e   : > { %1310 = vmatmul.mubr.bf16.gmra.mrb[24].mxu0 %v2031_v15 }
 0x32f   : > { %1317 = vmatprep.mubr.bf16.mxu0 %v2034_v16 }
 0x336   : > { %1318 = vmatmul.mubr.bf16.gmra.mrb[28].mxu0 %v2033_v17 }
 0x3d1   : > { %v2207_v23 = vpop.f32.mrb[0].mxu0 }
 0x3d2   : > { %v2208_v24 = vpop.f32.mrb[1].mxu0 }
 0x3d3   : > { %v2209_v1 = vadd.f32 %v2208_v24, %v2207_v23  ;;  %v2210_v2 = vpop.f32.mrb[2].mxu0  ;;  %v1095_v24 = vld [vmem:[%s3063_s17 + $0x50] sm:$0xff] }
 0x3d4   : > { %v2211_v3 = vpop.f32.mrb[3].mxu0 }
 0x3d5   : > { %v2212_v6 = vadd.f32 %v2211_v3, %v2210_v2  ;;  %v1326_v11 = vadd.f32 %v2209_v1, %v1085_v4  ;;  %v1096_v1 = vld [vmem:[%s3063_s17 + $0x58] sm:$0xff] }
 0x3d7   : > { %v1327_v12 = vadd.f32 %v2212_v6, %v1086_v5 }
 0x3d9   : > { %v2213_v25 = vpop.f32.mrb[4].mxu0  ;;  %v1342_v26 = vpack.c.bf16 %v1327_v12, %v1326_v11 }
 0x3da   : > { %v2214_v27 = vpop.f32.mrb[5].mxu0 }
 0x3db   : > { %v2215_v28 = vadd.f32 %v2214_v27, %v2213_v25  ;;  %v2216_v30 = vpop.f32.mrb[6].mxu0  ;;  %2361 = vmatprep.mubr.bf16.mxu1 %v1342_v26  ;;  %v1097_v27 = vld [vmem:[%s3063_s17 + $0x60] sm:$0xff] }
 0x3dc   : > { %v2217_v33 = vpop.f32.mrb[7].mxu0 }
 0x3dd   : > { %v2218_v34 = vadd.f32 %v2217_v33, %v2216_v30  ;;  %v1328_v35 = vadd.f32 %v2215_v28, %v1087_v31  ;;  %v1098_v28 = vld [vmem:[%s3063_s17 + $0x68] sm:$0xff] }
 0x3df   : > { %v1329_v37 = vadd.f32 %v2218_v34, %v1088_v32 }
 0x3e1   : > { %v2219_v38 = vpop.f32.mrb[8].mxu0  ;;  %v1343_v39 = vpack.c.bf16 %v1329_v37, %v1328_v35 }
 0x3e2   : > { %v2220_v41 = vpop.f32.mrb[9].mxu0 }
 0x3e3   : > { %v2221_v42 = vadd.f32 %v2220_v41, %v2219_v38  ;;  %v2222_v43 = vpop.f32.mrb[10].mxu0  ;;  %2362 = vmatmul.mubr.bf16.vlgmr.msra.gmra.mrb[0].mxu1 %v1343_v39  ;;  %v1100_v41 = vld [vmem:[%s3063_s17 + $0x78] sm:$0xff] }
 0x3e4   : > { %v2223_v46 = vpop.f32.mrb[11].mxu0  ;;  %2378 = vmatpush3.bf16.msra.mxu1 %v2553_v22 }
 0x3e5   : > { %v2224_v47 = vadd.f32 %v2223_v46, %v2222_v43  ;;  %2379 = vmatprep.subr.bf16.mxu1 %v2554_v40  ;;  %v1330_v49 = vadd.f32 %v2221_v42, %v1089_v44 }
 0x3e7   : > { %v1331_v50 = vadd.f32 %v2224_v47, %v1090_v45  ;;  %v2559_v47 = vld [vmem:[%s3169_s3 + $0xb0] sm:$0xff]  }
 0x3e8   : > { %2380 = vmatpush3.bf16.msra.mxu1 %v2554_v40  ;;  %v1099_v40 = vld [vmem:[%s3063_s17 + $0x70] sm:$0xff] }
 0x3e9   : > { %v2225_v52 = vpop.f32.mrb[12].mxu0  ;;  %v1344_v36 = vpack.c.bf16 %v1331_v50, %v1330_v49  ;;  %2381 = vmatprep.subr.bf16.mxu1 %v2555_v48  ;;  %v1367_v49 = vlaneseq }
 0x3ea   : > { %v2226_v55 = vpop.f32.mrb[13].mxu0 }
 0x3eb   : > { %v2227_v56 = vadd.f32 %v2226_v55, %v2225_v52  ;;  %v2228_v57 = vpop.f32.mrb[14].mxu0  ;;  %2365 = vmatprep.mubr.bf16.mxu1 %v1344_v36  ;;  %v3102_v50 = vshrl.u32 %v1367_v49, 7 }
 0x3ec   : > { %v2229_v59 = vpop.f32.mrb[15].mxu0  ;;  %2382 = vmatpush3.bf16.msra.mxu1 %v2555_v48  ;;  %v2560_v48 = vld [vmem:[%s3169_s3 + $0xb8] sm:$0xff]  }
 0x3ed   : > { %v2230_v60 = vadd.f32 %v2229_v59, %v2228_v57  ;;  %2383 = vmatprep.subr.bf16.mxu1 %v2556_v54  ;;  %v1332_v29 = vadd.f32 %v2227_v56, %v1091_v51  ;;  %v1369_v52 = vsub.s32 3, %v3102_v50 }
 0x3ef   : > { %v1333_v53 = vadd.f32 %v2230_v60, %v1092_v58  ;;  %v1370_v36 = vrot.slane %v2685_v0, %v1369_v52 }
 0x3f0   : > { %2384 = vmatpush3.bf16.msra.mxu1 %v2556_v54 }
 0x3f1   : > { %v2231_v62 = vpop.f32.mrb[16].mxu0  ;;  %v1345_v7 = vpack.c.bf16 %v1333_v53, %v1332_v29  ;;  %2385 = vmatprep.subr.bf16.mxu1 %v2557_v61 }
 0x3f2   : > { %v2232_v63 = vpop.f32.mrb[17].mxu0 }
 0x3f3   : > { %v2233_v9 = vadd.f32 %v2232_v63, %v2231_v62  ;;  %v2234_v10 = vpop.f32.mrb[18].mxu0  ;;  %2366 = vmatmul.mubr.bf16.gmra.mrb[4].mxu1 %v1345_v7 }
 0x3f4   : > { %v2235_v15 = vpop.f32.mrb[19].mxu0  ;;  %2386 = vmatpush3.bf16.msra.mxu1 %v2557_v61 }
 0x3f5   : > { %v2236_v16 = vadd.f32 %v2235_v15, %v2234_v10  ;;  %2387 = vmatprep.subr.bf16.mxu1 %v2558_v8  ;;  %v1334_v17 = vadd.f32 %v2233_v9, %v1093_v13 }
 0x3f7   : > { %v1335_v18 = vadd.f32 %v2236_v16, %v1094_v14 }
 0x3f8   : > { %2388 = vmatpush3.bf16.msra.mxu1 %v2558_v8 }
 0x3f9   : > { %v2237_v19 = vpop.f32.mrb[20].mxu0  ;;  %v1346_v20 = vpack.c.bf16 %v1335_v18, %v1334_v17  ;;  %2389 = vmatprep.subr.bf16.mxu1 %v2559_v47 }
 0x3fa   : > { %v2238_v21 = vpop.f32.mrb[21].mxu0 }
 0x3fb   : > { %v2239_v22 = vadd.f32 %v2238_v21, %v2237_v19  ;;  %v2240_v23 = vpop.f32.mrb[22].mxu0  ;;  %2369 = vmatprep.mubr.bf16.mxu1 %v1346_v20 }
 0x3fc   : > { %v2241_v2 = vpop.f32.mrb[23].mxu0  ;;  %2390 = vmatpush3.bf16.msra.mxu1 %v2559_v47  ;;  %v2613_v47 = vmov 0.0  }
 0x3fd   : > { %v2242_v3 = vadd.f32 %v2241_v2, %v2240_v23  ;;  %v1336_v4 = vadd.f32 %v2239_v22, %v1095_v24  ;;  %2391 = vmatprep.subr.bf16.mxu1 %v2560_v48  ;;  %2441 = vmatprep.mubr.msk.f32.mxu0 %vm2612_vm0, %v2613_v47 }
 0x3ff   : > { %v1337_v5 = vadd.f32 %v2242_v3, %v1096_v1 }
 0x400   : > { %2392 = vmatpush3.bf16.msra.mxu1 %v2560_v48  ;;  %v1559_v48 = vsub.s32 4, %v3102_v50 }
 0x401   : > { %v2243_v6 = vpop.f32.mrb[24].mxu0  ;;  %v1347_v11 = vpack.c.bf16 %v1337_v5, %v1336_v4 }
 0x402   : > { %v2244_v12 = vpop.f32.mrb[25].mxu0  ;;  %v1560_v49 = vrot.slane %v2685_v0, %v1559_v48 }
 0x403   : > { %v2245_v25 = vadd.f32 %v2244_v12, %v2243_v6  ;;  %v2246_v26 = vpop.f32.mrb[26].mxu0  ;;  %2370 = vmatmul.mubr.bf16.gmra.mrb[8].mxu1 %v1347_v11 }
 0x404   : > { %v2247_v30 = vpop.f32.mrb[27].mxu0 }
 0x405   : > { %v2248_v31 = vadd.f32 %v2247_v30, %v2246_v26  ;;  %v1338_v32 = vadd.f32 %v2245_v25, %v1097_v27 }
 0x407   : > { %v1339_v33 = vadd.f32 %v2248_v31, %v1098_v28 }
 0x409   : > { %v2249_v34 = vpop.f32.mrb[28].mxu0  ;;  %v1348_v35 = vpack.c.bf16 %v1339_v33, %v1338_v32 }
 0x40a   : > { %v2250_v37 = vpop.f32.mrb[29].mxu0 }
 0x40b   : > { %v2251_v38 = vadd.f32 %v2250_v37, %v2249_v34  ;;  %v2252_v39 = vpop.f32.mrb[30].mxu0  ;;  %2373 = vmatprep.mubr.bf16.mxu1 %v1348_v35 }
 0x40c   : > { %v2253_v42 = vpop.f32.mrb[31].mxu0 }
 0x40d   : > { %v2254_v43 = vadd.f32 %v2253_v42, %v2252_v39  ;;  %v1340_v44 = vadd.f32 %v2251_v38, %v1099_v40 }
 0x40f   : > { %v1341_v45 = vadd.f32 %v2254_v43, %v1100_v41 }
 0x411   : > { %v1349_v46 = vpack.c.bf16 %v1341_v45, %v1340_v44 }
 0x413   : > { %2374 = vmatmul.mubr.bf16.gmra.mrb[12].mxu1 %v1349_v46  ;;  %v2611_v46 = vmov 0.0|0.0  }
 0x414   : > { %2464 = vmatprep.subr.bf16.mxu0 %v2611_v46 }
 0x4b6   : > { %v2363_v54 = vpop.f32.mrb[0].mxu1 }
 0x4b7   : > { %v1462_v55 = vadd.f32 %v2363_v54, %v1370_v36  ;;  %v1453_v56 = vpop.f32.mrb[1].mxu1 }
 0x4b8   : > { %v1454_v57 = vadd.f32 %v1453_v56, %v1370_v36  ;;  %v2364_v51 = vpop.f32.mrb[2].mxu1 }
 0x4b9   : > { %v1465_v58 = vadd.f32 %v2364_v51, %v1370_v36  ;;  %v1456_v59 = vpop.f32.mrb[3].mxu1  ;;  %v1518_v61 = vmax.f32 %v1462_v55, 0.0 }
 0x4ba   : > { %v1457_v60 = vadd.f32 %v1456_v59, %v1370_v36  ;;  %v1516_v53 = vmax.f32 %v1454_v57, 0.0 }
 0x4bb   : > { %v1519_v29 = vmax.f32 %v1465_v58, 0.0 }
 0x4bc   : > { %v1517_v62 = vmax.f32 %v1457_v60, 0.0 }
 0x4bd   : > { %v1533_v7 = vpack.c.bf16 %v1519_v29, %v1518_v61 }
 0x4be   : > { %v1532_v8 = vpack.c.bf16 %v1517_v62, %v1516_v53 }
 0x4c0   : > { %2393 = vmatprep.mubr.bf16.mxu1 %v1532_v8 }
 0x4c1   : > { %2394 = vmatmul.mubr.bf16.vlgmr.msra.gmra.mrb[16].mxu1 %v1533_v7 }
 0x4c6   : > { %v2367_v63 = vpop.f32.mrb[4].mxu1 }
 0x4c7   : > { %v1478_v9 = vadd.f32 %v2367_v63, %v1370_v36  ;;  %v1469_v10 = vpop.f32.mrb[5].mxu1 }
 0x4c8   : > { %v1470_v13 = vadd.f32 %v1469_v10, %v1370_v36  ;;  %v2368_v14 = vpop.f32.mrb[6].mxu1 }
 0x4c9   : > { %v1481_v15 = vadd.f32 %v2368_v14, %v1370_v36  ;;  %v1472_v16 = vpop.f32.mrb[7].mxu1  ;;  %v1522_v18 = vmax.f32 %v1478_v9, 0.0 }
 0x4ca   : > { %v1473_v17 = vadd.f32 %v1472_v16, %v1370_v36  ;;  %v1520_v20 = vmax.f32 %v1470_v13, 0.0 }
 0x4cb   : > { %v1523_v19 = vmax.f32 %v1481_v15, 0.0 }
 0x4cc   : > { %v1521_v21 = vmax.f32 %v1473_v17, 0.0 }
 0x4cd   : > { %v1535_v22 = vpack.c.bf16 %v1523_v19, %v1522_v18 }
 0x4ce   : > { %v1534_v23 = vpack.c.bf16 %v1521_v21, %v1520_v20 }
 0x4d0   : > { %2397 = vmatprep.mubr.bf16.mxu1 %v1534_v23 }
 0x4d1   : > { %2398 = vmatmul.mubr.bf16.gmra.mrb[20].mxu1 %v1535_v22 }
 0x4d6   : > { %v2371_v24 = vpop.f32.mrb[8].mxu1 }
 0x4d7   : > { %v1494_v1 = vadd.f32 %v2371_v24, %v1370_v36  ;;  %v1485_v2 = vpop.f32.mrb[9].mxu1 }
 0x4d8   : > { %v1486_v3 = vadd.f32 %v1485_v2, %v1370_v36  ;;  %v2372_v4 = vpop.f32.mrb[10].mxu1 }
 0x4d9   : > { %v1497_v5 = vadd.f32 %v2372_v4, %v1370_v36  ;;  %v1488_v6 = vpop.f32.mrb[11].mxu1  ;;  %v1526_v12 = vmax.f32 %v1494_v1, 0.0 }
 0x4da   : > { %v1489_v11 = vadd.f32 %v1488_v6, %v1370_v36  ;;  %v1524_v26 = vmax.f32 %v1486_v3, 0.0 }
 0x4db   : > { %v1527_v25 = vmax.f32 %v1497_v5, 0.0 }
 0x4dc   : > { %v1525_v27 = vmax.f32 %v1489_v11, 0.0 }
 0x4dd   : > { %v1537_v28 = vpack.c.bf16 %v1527_v25, %v1526_v12 }
 0x4de   : > { %v1536_v30 = vpack.c.bf16 %v1525_v27, %v1524_v26 }
 0x4e0   : > { %2401 = vmatprep.mubr.bf16.mxu1 %v1536_v30 }
 0x4e1   : > { %2402 = vmatmul.mubr.bf16.gmra.mrb[24].mxu1 %v1537_v28 }
 0x4e6   : > { %v2375_v31 = vpop.f32.mrb[12].mxu1 }
 0x4e7   : > { %v1510_v32 = vadd.f32 %v2375_v31, %v1370_v36  ;;  %v1501_v33 = vpop.f32.mrb[13].mxu1 }
 0x4e8   : > { %v1502_v34 = vadd.f32 %v1501_v33, %v1370_v36  ;;  %v2376_v35 = vpop.f32.mrb[14].mxu1 }
 0x4e9   : > { %v1513_v37 = vadd.f32 %v2376_v35, %v1370_v36  ;;  %v1504_v38 = vpop.f32.mrb[15].mxu1  ;;  %v1530_v40 = vmax.f32 %v1510_v32, 0.0 }
 0x4ea   : > { %v1505_v39 = vadd.f32 %v1504_v38, %v1370_v36  ;;  %v1528_v42 = vmax.f32 %v1502_v34, 0.0 }
 0x4eb   : > { %v1531_v41 = vmax.f32 %v1513_v37, 0.0 }
 0x4ec   : > { %v1529_v43 = vmax.f32 %v1505_v39, 0.0 }
 0x4ed   : > { %v1539_v44 = vpack.c.bf16 %v1531_v41, %v1530_v40 }
 0x4ee   : > { %v1538_v45 = vpack.c.bf16 %v1529_v43, %v1528_v42 }
 0x4f0   : > { %2405 = vmatprep.mubr.bf16.mxu1 %v1538_v45  ;;  %v1722_v45 = vld [vmem:[#allocation3] sm:$0xff] }
 0x4f1   : > { %2406 = vmatmul.mubr.bf16.gmra.mrb[28].mxu1 %v1539_v44  ;;  %v1723_v44 = vld [vmem:[%s2694_s9] sm:$0xff] }
 0x594   : > { %v2395_v52 = vpop.f32.mrb[16].mxu1 }
 0x595   : > { %v1652_v36 = vadd.f32 %v2395_v52, %v1560_v49  ;;  %v1643_v54 = vpop.f32.mrb[17].mxu1 }
 0x596   : > { %v1644_v55 = vadd.f32 %v1643_v54, %v1560_v49  ;;  %v2396_v56 = vpop.f32.mrb[18].mxu1  ;;  %v2563_v54 = vld [vmem:[%s3169_s3 + $0xd0] sm:$0xff] (!%p2083_p10)  }
 0x597   : > { %v1655_v57 = vadd.f32 %v2396_v56, %v1560_v49  ;;  %v1646_v51 = vpop.f32.mrb[19].mxu1  ;;  %v1708_v59 = vmax.f32 %v1652_v36, 0.0  ;;  %v2614_v36 = vmov (!%p2083_p10), 0.0   ;;  %v2565_v56 = vld [vmem:[%s3169_s3 + $0xe0] sm:$0xff] (!%p2083_p10)  }
 0x598   : > { %v1647_v58 = vadd.f32 %v1646_v51, %v1560_v49  ;;  %v1706_v61 = vmax.f32 %v1644_v55, 0.0  ;;  %v2564_v55 = vld [vmem:[%s3169_s3 + $0xd8] sm:$0xff] (!%p2083_p10)   ;;  %v2567_v51 = vld [vmem:[%s3169_s3 + $0xf0] sm:$0xff] (!%p2083_p10)  }
 0x599   : > { %v1709_v60 = vmax.f32 %v1655_v57, 0.0  ;;  %v2566_v57 = vld [vmem:[%s3169_s3 + $0xe8] sm:$0xff] (!%p2083_p10)  }
 0x59a   : > { %v1707_v29 = vmax.f32 %v1647_v58, 0.0  ;;  %v2568_v58 = vld [vmem:[%s3169_s3 + $0xf8] sm:$0xff] (!%p2083_p10)  }
 0x59b   : > { %v2468_v53 = vpack.c.bf16 %v1709_v60, %v1708_v59 }
 0x59c   : > { %v2465_v62 = vpack.c.bf16 %v1707_v29, %v1706_v61  ;;  %v1821_v61 = vsub.s32 (!%p2083_p10), 5, %v3102_v50 }
 0x59e   : > { %2466 = vmatpush3.bf16.msra.mxu0 %v2465_v62  ;;  %v1822_v29 = vrot.slane (!%p2083_p10), %v2685_v0, %v1821_v61 }
 0x59f   : > { %2467 = vmatprep.subr.bf16.mxu0 %v2611_v46 }
 0x5a2   : > { %2469 = vmatpush3.bf16.msra.mxu0 %v2468_v53  ;;  %v1914_v53 = vsub.s32 (!%p2083_p10), 6, %v3102_v50 }
 0x5a3   : > { %2470 = vmatprep.subr.bf16.mxu0 %v2611_v46 }
 0x5a4   : > { %v2399_v7 = vpop.f32.mrb[20].mxu1 }
 0x5a5   : > { %v1668_v8 = vadd.f32 %v2399_v7, %v1560_v49  ;;  %v1659_v63 = vpop.f32.mrb[21].mxu1 }
 0x5a6   : > { %v1660_v9 = vadd.f32 %v1659_v63, %v1560_v49  ;;  %v2400_v10 = vpop.f32.mrb[22].mxu1  ;;  %v1915_v63 = vrot.slane (!%p2083_p10), %v2685_v0, %v1914_v53 }
 0x5a7   : > { %v1671_v13 = vadd.f32 %v2400_v10, %v1560_v49  ;;  %v1662_v14 = vpop.f32.mrb[23].mxu1  ;;  %v1712_v16 = vmax.f32 %v1668_v8, 0.0 }
 0x5a8   : > { %v1663_v15 = vadd.f32 %v1662_v14, %v1560_v49  ;;  %v1710_v18 = vmax.f32 %v1660_v9, 0.0 }
 0x5a9   : > { %v1713_v17 = vmax.f32 %v1671_v13, 0.0 }
 0x5aa   : > { %v1711_v19 = vmax.f32 %v1663_v15, 0.0  ;;  %v1921_v15 = vsub.s32 (!%p2083_p10), 7, %v3102_v50 }
 0x5ab   : > { %v2474_v20 = vpack.c.bf16 %v1713_v17, %v1712_v16 }
 0x5ac   : > { %v2471_v21 = vpack.c.bf16 %v1711_v19, %v1710_v18  ;;  %v1922_v16 = vrot.slane (!%p2083_p10), %v2685_v0, %v1921_v15 }
 0x5ae   : > { %2472 = vmatpush3.bf16.msra.mxu0 %v2471_v21 }
 0x5af   : > { %2473 = vmatprep.subr.bf16.mxu0 %v2611_v46 }
 0x5b2   : > { %2475 = vmatpush3.bf16.msra.mxu0 %v2474_v20 }
 0x5b3   : > { %2476 = vmatprep.subr.bf16.mxu0 %v2611_v46 }
 0x5b4   : > { %v2403_v22 = vpop.f32.mrb[24].mxu1 }
 0x5b5   : > { %v1684_v23 = vadd.f32 %v2403_v22, %v1560_v49  ;;  %v1675_v24 = vpop.f32.mrb[25].mxu1 }
 0x5b6   : > { %v1676_v1 = vadd.f32 %v1675_v24, %v1560_v49  ;;  %v2404_v2 = vpop.f32.mrb[26].mxu1 }
 0x5b7   : > { %v1687_v3 = vadd.f32 %v2404_v2, %v1560_v49  ;;  %v1678_v4 = vpop.f32.mrb[27].mxu1  ;;  %v1716_v6 = vmax.f32 %v1684_v23, 0.0 }
 0x5b8   : > { %v1679_v5 = vadd.f32 %v1678_v4, %v1560_v49  ;;  %v1714_v12 = vmax.f32 %v1676_v1, 0.0 }
 0x5b9   : > { %v1717_v11 = vmax.f32 %v1687_v3, 0.0 }
 0x5ba   : > { %v1715_v25 = vmax.f32 %v1679_v5, 0.0 }
 0x5bb   : > { %v2480_v26 = vpack.c.bf16 %v1717_v11, %v1716_v6 }
 0x5bc   : > { %v2477_v27 = vpack.c.bf16 %v1715_v25, %v1714_v12 }
 0x5be   : > { %2478 = vmatpush3.bf16.msra.mxu0 %v2477_v27 }
 0x5bf   : > { %2479 = vmatprep.subr.bf16.mxu0 %v2611_v46 }
 0x5c2   : > { %2481 = vmatpush3.bf16.msra.mxu0 %v2480_v26 }
 0x5c3   : > { %2482 = vmatprep.subr.bf16.mxu0 %v2611_v46 }
 0x5c4   : > { %v2407_v28 = vpop.f32.mrb[28].mxu1 }
 0x5c5   : > { %v1700_v30 = vadd.f32 %v2407_v28, %v1560_v49  ;;  %v1691_v31 = vpop.f32.mrb[29].mxu1 }
 0x5c6   : > { %v1692_v32 = vadd.f32 %v1691_v31, %v1560_v49  ;;  %v2408_v33 = vpop.f32.mrb[30].mxu1 }
 0x5c7   : > { %v1703_v34 = vadd.f32 %v2408_v33, %v1560_v49  ;;  %v1694_v35 = vpop.f32.mrb[31].mxu1  ;;  %v1720_v38 = vmax.f32 %v1700_v30, 0.0 }
 0x5c8   : > { %v1695_v37 = vadd.f32 %v1694_v35, %v1560_v49  ;;  %v1718_v40 = vmax.f32 %v1692_v32, 0.0  ;;  %v2561_v49 = vld [vmem:[%s3169_s3 + $0xc0] sm:$0xff] (!%p2083_p10)  }
 0x5c9   : > { %v1721_v39 = vmax.f32 %v1703_v34, 0.0 }
 0x5ca   : > { %v1719_v41 = vmax.f32 %v1695_v37, 0.0 }
 0x5cb   : > { %v2486_v42 = vpack.c.bf16 %v1721_v39, %v1720_v38 }
 0x5cc   : > { %v2483_v43 = vpack.c.bf16 %v1719_v41, %v1718_v40 }
 0x5ce   : > { %2484 = vmatpush3.bf16.msra.mxu0 %v2483_v43 }
 0x5cf   : > { %2485 = vmatprep.subr.bf16.mxu0 %v2611_v46  ;;  %v2562_v46 = vld [vmem:[%s3169_s3 + $0xc8] sm:$0xff] (!%p2083_p10)  }
 0x5d2   : > { %2487 = vmatpush3.bf16.msra.mxu0 %v2486_v42 }
 0x5d3   : > { %2444 = vmatprep.subr.bf16.mxu0 (!%p2083_p10), %v2614_v36 }
 0x5d5   : > { %2442 = vmatmul.mubr.f32.vlgmr.msra.gmra.mrb[32].mxu0 %v1723_v44 }
 0x5d6   : > { %2445 = vmatpush3.bf16.msra.mxu0 (!%p2083_p10), %v2561_v49  ;;  %2460 = vmatprep.mubr.msk.bf16.mxu0 (!%p2083_p10), %vm2615_vm1, %v2614_v36 }
 0x5d7   : > { %2446 = vmatprep.subr.bf16.mxu0 (!%p2083_p10), %v2614_v36 }
 0x5da   : > { %2447 = vmatpush3.bf16.msra.mxu0 (!%p2083_p10), %v2562_v46 }
 0x5db   : > { %2448 = vmatprep.subr.bf16.mxu0 (!%p2083_p10), %v2614_v36 }
 0x5de   : > { %2449 = vmatpush3.bf16.msra.mxu0 (!%p2083_p10), %v2563_v54 }
 0x5df   : > { %2450 = vmatprep.subr.bf16.mxu0 (!%p2083_p10), %v2614_v36 }
 0x5e2   : > { %2451 = vmatpush3.bf16.msra.mxu0 (!%p2083_p10), %v2564_v55 }
 0x5e3   : > { %2452 = vmatprep.subr.bf16.mxu0 (!%p2083_p10), %v2614_v36 }
 0x5e6   : > { %2453 = vmatpush3.bf16.msra.mxu0 (!%p2083_p10), %v2565_v56 }
 0x5e7   : > { %2454 = vmatprep.subr.bf16.mxu0 (!%p2083_p10), %v2614_v36 }
 0x5ea   : > { %2455 = vmatpush3.bf16.msra.mxu0 (!%p2083_p10), %v2566_v57 }
 0x5eb   : > { %2456 = vmatprep.subr.bf16.mxu0 (!%p2083_p10), %v2614_v36 }
 0x5ee   : > { %2457 = vmatpush3.bf16.msra.mxu0 (!%p2083_p10), %v2567_v51 }
 0x5ef   : > { %2458 = vmatprep.subr.bf16.mxu0 (!%p2083_p10), %v2614_v36 }
 0x5f2   : > { %2459 = vmatpush3.bf16.msra.mxu0 (!%p2083_p10), %v2568_v58 }
 0x6a5   : > { %1799 = sbr.rel (%p2083_p10) target bundleno = 2080 (0x820), region = 56 }
 0x6a8   : > { %v1790_v47 = vpop.f32.mrb[32].mxu0 }
 0x6a9   : > { %v1794_v48 = vadd.f32 %v1790_v47, %v1722_v45  ;;  %v2443_v52 = vpop.f32.mrb[33].mxu0 }
 0x6ab   : > { %1795 = vst [vmem:[#allocation3] sm:$0xff] %v1794_v48 }
 0x6b2   : > { %v1800_v59 = vld [vmem:[#allocation3] sm:$0xff] }
 0x6b3   : > { %v1801_v60 = vpack.c.bf16 %v1800_v59, %v1800_v59 }
 0x6b5   : > { %2461 = vmatmul.mubr.bf16.vlgmr.msra.gmra.mrb[0].mxu0 %v1801_v60 }
 0x788   : > { %v1905_v62 = vpop.f32.mrb[0].mxu0 }
 0x789   : > { %v1906_v7 = vadd.f32 %v1905_v62, %v1822_v29  ;;  %v2462_v8 = vpop.f32.mrb[1].mxu0 }
 0x78a   : > { %v1908_v9 = vpop.f32.mrb[2].mxu0 }
 0x78b   : > { %v1911_v10 = vmax.f32 %v1906_v7, 0.0  ;;  %v2463_v13 = vpop.f32.mrb[3].mxu0 }
 0x78d   : > { %v1916_v14 = vmul.f32 %v1915_v63, %v1911_v10 }
 0x78f   : > { %1917 = vadd.xlane.f32.xlu0 %v1916_v14 }
 0x81c   : > { %v1918_v17 = vpop.xlane.xlu0 %1917 }
 0x81d   : > { %v1923_v18 = vadd.f32 %v1922_v16, %v1918_v17 }
 0x81f   : > { %1925 = vst.msk [vmem:[%s3171_s5] sm:$0xff] %vm1924_vm2, %v1923_v18 }
 0x820 PF: > { %s15_s22 = sadd.s32 1, %s2607_s22   ;;  %s3172_s18 = smov %s2599_s20 }
 0x821   : > { %p12_p11 = scmp.ge.s32.totalorder %s15_s22, 6   ;;  %s3173_s19 = smov %s2603_s21 }
 0x822   : > { %s3174_s20 = smov %s3177_s23  ;;  %s3175_s21 = smov %s3181_s24 }
 0x823   :  { %14 = sbr.rel (!%p12_p11) target bundleno = 3 (0x3), region = 91 }

</bundles_post_ra>
